<compile_context>
chip_gen: v6e
topology: v6e:2x2x1
jax: 0.10.0
libtpu: 0.0.40
codegen_flags: <defaults>
</compile_context>

<pallas_src>
import functools
import math

import jax
import jax.numpy as jnp
from jax import lax
from jax.experimental import pallas as pl
from jax.experimental.pallas import tpu as pltpu


def _round_up(n, m):
    return ((n + m - 1) // m) * m


# Row indices of the packed bias / layernorm-parameter block (f32, one VMEM tile).
_BP, _BQ, _BKV, _BO, _G1, _BE1, _B1, _B2, _G2, _BE2, _BC, _BB1, _BB2, _BB3 = range(14)
_N_VEC_ROWS = 14


# ---------------------------------------------------------------------------
# Fused Pallas kernel: one grid step == (batch element, query-row tile)
# ---------------------------------------------------------------------------

def _detr3d_enc_kernel(
    feat_q_ref,                                  # (TQ, C) query-row features
    feat_kv_ref,                                 # (N,  C) full-sequence features (K/V)
    wp_ref,                                      # input_proj            (C, H)   bf16
    wq_ref, wkv_ref, wo_ref,                     # attention projections (H,H)(H,2H)(H,H)
    w1_ref, w2_ref,                              # FFN                   (H,Fd)(Fd,H)
    wc_ref, wb1_ref, wb2_ref, wb3_ref,           # heads (Wc/Wb3 lane-padded)
    vec_ref,                                     # packed biases/gammas  (14, W) f32
    hs_ref, logits_ref, boxes_ref,               # outputs
    *, num_heads, head_dim, hidden, ffn_dim, cls_pad, box_pad, eps):

    f32 = jnp.float32
    bf16 = jnp.bfloat16

    vec = vec_ref[...]                           # (14, W) f32

    def row(i, width):                           # (1, width) broadcast row
        return vec[i:i + 1, :width]

    bp = row(_BP, hidden)
    bq = row(_BQ, hidden)
    bkv = row(_BKV, 2 * hidden)
    bo = row(_BO, hidden)
    g1, be1 = row(_G1, hidden), row(_BE1, hidden)
    b1 = row(_B1, ffn_dim)
    b2 = row(_B2, hidden)
    g2, be2 = row(_G2, hidden), row(_BE2, hidden)
    bc = row(_BC, cls_pad)
    bb1, bb2 = row(_BB1, hidden), row(_BB2, hidden)
    bb3 = row(_BB3, box_pad)

    xq = feat_q_ref[...].astype(bf16)            # (TQ, C)
    xkv = feat_kv_ref[...].astype(bf16)          # (N,  C)

    # input_proj (query rows + full sequence for K/V).  detr_mask == all-valid -> no mask.
    src_q = jnp.dot(xq, wp_ref[...], preferred_element_type=f32) + bp     # (TQ, H)
    src_kv = jnp.dot(xkv, wp_ref[...], preferred_element_type=f32) + bp   # (N, H)

    # Q only for the query tile, K/V for the whole sequence; fold 1/sqrt(dh) into q.
    scale = 1.0 / math.sqrt(head_dim)
    q = (jnp.dot(src_q.astype(bf16), wq_ref[...], preferred_element_type=f32) + bq) * scale
    kv = jnp.dot(src_kv.astype(bf16), wkv_ref[...], preferred_element_type=f32) + bkv
    k = kv[:, :hidden]
    v = kv[:, hidden:]

    wo = wo_ref[...]                             # (H, H) bf16, loaded once

    # Multi-head attention accumulated through Wo (no concat; bounded per-head liveness).
    acc = src_q + bo                             # residual + out-proj bias folded in
    for h in range(num_heads):                   # static loop; serial data-dep on acc
        lo = h * head_dim
        hi = lo + head_dim
        qh = q[:, lo:hi].astype(bf16)
        kh = k[:, lo:hi].astype(bf16)
        vh = v[:, lo:hi].astype(bf16)
        s = lax.dot_general(qh, kh, (((1,), (1,)), ((), ())),
                            preferred_element_type=f32)                   # (TQ, N)
        m = jnp.max(s, axis=-1, keepdims=True)
        p = jnp.exp(s - m)
        denom = jnp.sum(p, axis=-1, keepdims=True)
        p = p * pl.reciprocal(denom, approx=False)                        # exact softmax
        ph = jnp.dot(p.astype(bf16), vh, preferred_element_type=f32)      # (TQ, dh)
        acc = acc + jnp.dot(ph.astype(bf16), wo[lo:hi, :],
                            preferred_element_type=f32)

    # LayerNorm 1 (residual already folded into acc)
    mu = jnp.mean(acc, axis=-1, keepdims=True)
    var = jnp.mean((acc - mu) * (acc - mu), axis=-1, keepdims=True)
    y = (acc - mu) * lax.rsqrt(var + eps) * g1 + be1

    # FFN with bias + ReLU fused into the matmul epilogue
    ff = jnp.maximum(jnp.dot(y.astype(bf16), w1_ref[...],
                             preferred_element_type=f32) + b1, 0.0)
    ff = jnp.dot(ff.astype(bf16), w2_ref[...], preferred_element_type=f32) + b2

    # residual + LayerNorm 2
    z = y + ff
    mu = jnp.mean(z, axis=-1, keepdims=True)
    var = jnp.mean((z - mu) * (z - mu), axis=-1, keepdims=True)
    hs = (z - mu) * lax.rsqrt(var + eps) * g2 + be2
    hs_ref[...] = hs.astype(hs_ref.dtype)

    # ---------------- prediction heads (lane-dense padded outputs) ----------
    hsb = hs.astype(bf16)
    logits_ref[...] = (jnp.dot(hsb, wc_ref[...], preferred_element_type=f32)
                       + bc).astype(logits_ref.dtype)

    hb = jnp.maximum(jnp.dot(hsb, wb1_ref[...], preferred_element_type=f32) + bb1, 0.0)
    hb = jnp.maximum(jnp.dot(hb.astype(bf16), wb2_ref[...],
                             preferred_element_type=f32) + bb2, 0.0)
    boxes_ref[...] = (jnp.dot(hb.astype(bf16), wb3_ref[...], preferred_element_type=f32)
                      + bb3).astype(boxes_ref.dtype)


# ---------------------------------------------------------------------------
# DETR3D (encoder-only configuration)
# ---------------------------------------------------------------------------

class DETR3DPallas:
    def __init__(self, input_channels, hidden_dim, num_heads, dim_feedforward,
                 class_output_shape, bbox_output_shape, seed=0):
        assert hidden_dim % num_heads == 0
        self.C = input_channels
        self.H = hidden_dim
        self.nH = num_heads
        self.dh = hidden_dim // num_heads
        self.Fd = dim_feedforward
        self.n_cls = class_output_shape
        self.n_box = bbox_output_shape
        self.cls_pad = _round_up(class_output_shape, 128)    # lane-dense class head
        self.box_pad = _round_up(bbox_output_shape, 128)     # lane-dense bbox head

        key = jax.random.PRNGKey(seed)

        def init(shape, k, scale=0.05):
            return scale * jax.random.normal(k, shape, jnp.float32)

        keys = iter(jax.random.split(key, 40))
        H, C, Fd = hidden_dim, input_channels, dim_feedforward
        bf16 = jnp.bfloat16

        # weight matrices (bf16 MXU operands)
        self.Wp = init((C, H), next(keys)).astype(bf16)
        self.Wq = init((H, H), next(keys)).astype(bf16)
        self.Wkv = init((H, 2 * H), next(keys)).astype(bf16)
        self.Wo = init((H, H), next(keys)).astype(bf16)
        self.W1 = init((H, Fd), next(keys)).astype(bf16)
        self.W2 = init((Fd, H), next(keys)).astype(bf16)
        self.Wb1 = init((H, H), next(keys)).astype(bf16)
        self.Wb2 = init((H, H), next(keys)).astype(bf16)
        wc = jnp.zeros((H, self.cls_pad), jnp.float32).at[:, :self.n_cls].set(
            init((H, self.n_cls), next(keys)))
        wb3 = jnp.zeros((H, self.box_pad), jnp.float32).at[:, :self.n_box].set(
            init((H, self.n_box), next(keys)))
        self.Wc = wc.astype(bf16)
        self.Wb3 = wb3.astype(bf16)

        # biases / layernorm params (f32, packed into a single VMEM block)
        self.bp = init((H,), next(keys))
        self.bq = init((H,), next(keys))
        self.bkv = init((2 * H,), next(keys))
        self.bo = init((H,), next(keys))
        self.g1 = 1.0 + init((H,), next(keys))
        self.be1 = init((H,), next(keys))
        self.b1 = init((Fd,), next(keys))
        self.b2 = init((H,), next(keys))
        self.g2 = 1.0 + init((H,), next(keys))
        self.be2 = init((H,), next(keys))
        self.bc = init((self.n_cls,), next(keys))
        self.bb1 = init((H,), next(keys))
        self.bb2 = init((H,), next(keys))
        self.bb3 = init((self.n_box,), next(keys))

        self.vec_width = max(2 * H, Fd, self.cls_pad, self.box_pad)
        vec = jnp.zeros((_N_VEC_ROWS, self.vec_width), jnp.float32)

        def put(v, i, x):
            return v.at[i, :x.shape[0]].set(x)

        vec = put(vec, _BP, self.bp)
        vec = put(vec, _BQ, self.bq)
        vec = put(vec, _BKV, self.bkv)
        vec = put(vec, _BO, self.bo)
        vec = put(vec, _G1, self.g1)
        vec = put(vec, _BE1, self.be1)
        vec = put(vec, _B1, self.b1)
        vec = put(vec, _B2, self.b2)
        vec = put(vec, _G2, self.g2)
        vec = put(vec, _BE2, self.be2)
        vec = put(vec, _BC, self.bc)
        vec = put(vec, _BB1, self.bb1)
        vec = put(vec, _BB2, self.bb2)
        vec = put(vec, _BB3, self.bb3)
        self.vec = vec

    @staticmethod
    def _pick_q_tile(N):
        # Full sequence per step at small N; tile queries at production N so the per-step
        # score working set is bounded and there are enough grid steps to pipeline.
        if N <= 512:
            return N
        for t in (512, 256, 128):
            if N % t == 0:
                return t
        return N

    def __call__(self, xyz, features):
        B, N, _ = xyz.shape
        _, _, C = features.shape
        assert C == self.C
        H = self.H

        # mask_type == 'detr_mask': key padding mask of zeros (all valid) -> no-op.
        # pos_embd_type == 'none': pos_embd is None.

        TQ = self._pick_q_tile(N)
        n_q_tiles = N // TQ

        matrices = [self.Wp, self.Wq, self.Wkv, self.Wo, self.W1, self.W2,
                    self.Wc, self.Wb1, self.Wb2, self.Wb3]

        # Query-tile view of features + full-sequence view (for K/V); weights use constant
        # index maps -> fetched once and VMEM-resident across the (parallel) grid.
        in_specs = [
            pl.BlockSpec((pl.Squeezed(), TQ, C), lambda b, qi: (b, qi, 0)),
            pl.BlockSpec((pl.Squeezed(), N, C), lambda b, qi: (b, 0, 0)),
        ]
        for w in matrices:
            in_specs.append(pl.BlockSpec(w.shape, lambda b, qi: (0, 0)))
        in_specs.append(pl.BlockSpec(self.vec.shape, lambda b, qi: (0, 0)))

        out_shape = (
            jax.ShapeDtypeStruct((B, N, H), jnp.float32),
            jax.ShapeDtypeStruct((B, N, self.cls_pad), jnp.float32),
            jax.ShapeDtypeStruct((B, N, self.box_pad), jnp.float32),
        )
        out_specs = (
            pl.BlockSpec((pl.Squeezed(), TQ, H), lambda b, qi: (b, qi, 0)),
            pl.BlockSpec((pl.Squeezed(), TQ, self.cls_pad), lambda b, qi: (b, qi, 0)),
            pl.BlockSpec((pl.Squeezed(), TQ, self.box_pad), lambda b, qi: (b, qi, 0)),
        )

        kernel = functools.partial(
            _detr3d_enc_kernel,
            num_heads=self.nH, head_dim=self.dh, hidden=H, ffn_dim=self.Fd,
            cls_pad=self.cls_pad, box_pad=self.box_pad, eps=1e-5)

        hs, logits_pad, boxes_pad = pl.pallas_call(
            kernel,
            out_shape=out_shape,
            grid_spec=pltpu.PrefetchScalarGridSpec(
                num_scalar_prefetch=0,
                grid=(B, n_q_tiles),
                in_specs=in_specs,
                out_specs=out_specs,
            ),
            compiler_params=pltpu.CompilerParams(
                dimension_semantics=("parallel", "parallel")),
        )(features, features, *matrices, self.vec)

        output = {
            "pred_logits": logits_pad[..., :self.n_cls],   # [B, N, class_output_shape]
            "pred_boxes": boxes_pad[..., :self.n_box],     # [B, N, bbox_output_shape]
            # Matches the PyTorch code literally: output['refined_vote_feature'] = hs[-1]
            "refined_vote_feature": hs[-1],
        }
        return output


# ---------------------------------------------------------------------------
# Pure-JAX reference (same bf16 rounding points) for a numerical sanity check
# ---------------------------------------------------------------------------

def _reference_forward(model, features):
    bf16, f32 = jnp.bfloat16, jnp.float32
    B, N, C = features.shape
    H, nH, dh = model.H, model.nH, model.dh

    def bround(a):                                 # emulate bf16 MXU operands exactly
        return a.astype(bf16).astype(f32)

    def mm(a, w):
        return jnp.dot(bround(a), w.astype(f32))

    x = features.reshape(B * N, C)
    src = mm(x, model.Wp) + model.bp
    q = (mm(src, model.Wq) + model.bq) * (1.0 / math.sqrt(dh))
    kv = mm(src, model.Wkv) + model.bkv
    k, v = kv[:, :H], kv[:, H:]

    q = bround(q).reshape(B, N, nH, dh).transpose(0, 2, 1, 3)
    k = bround(k).reshape(B, N, nH, dh).transpose(0, 2, 1, 3)
    v = bround(v).reshape(B, N, nH, dh).transpose(0, 2, 1, 3)
    s = jnp.einsum("bhqd,bhkd->bhqk", q, k)
    p = jax.nn.softmax(s, axis=-1)
    attn = jnp.einsum("bhqk,bhkd->bhqd", bround(p), v)
    attn = attn.transpose(0, 2, 1, 3).reshape(B * N, H)
    attn = mm(attn, model.Wo) + model.bo

    def ln(t, g, b):
        mu = t.mean(-1, keepdims=True)
        var = ((t - mu) ** 2).mean(-1, keepdims=True)
        return (t - mu) * lax.rsqrt(var + 1e-5) * g + b

    y = ln(src + attn, model.g1, model.be1)
    ff = mm(jnp.maximum(mm(y, model.W1) + model.b1, 0.0), model.W2) + model.b2
    hs = ln(y + ff, model.g2, model.be2)
    logits = mm(hs, model.Wc)[:, :model.n_cls] + model.bc
    hb = jnp.maximum(mm(hs, model.Wb1) + model.bb1, 0.0)
    hb = jnp.maximum(mm(hb, model.Wb2) + model.bb2, 0.0)
    boxes = mm(hb, model.Wb3)[:, :model.n_box] + model.bb3
    return (hs.reshape(B, N, H),
            logits.reshape(B, N, -1),
            boxes.reshape(B, N, -1))


if __name__ == "__main__":
    B, N = 2, 16                 # batch, number of points (seq)
    C = 8                        # input point-feature channels
    HIDDEN = 32                  # transformer d_model
    HEADS = 4
    FFN = 64
    N_CLS = 10                   # class_output_shape
    N_BOX = 8                    # bbox_output_shape

    key = jax.random.PRNGKey(0)
    kx, kf = jax.random.split(key)
    xyz = jax.random.normal(kx, (B, N, 3), jnp.float32)
    features = jax.random.normal(kf, (B, N, C), jnp.float32)

    model = DETR3DPallas(C, HIDDEN, HEADS, FFN, N_CLS, N_BOX, seed=0)
    out = model(xyz, features)

    jax.block_until_ready(out["pred_logits"])
    jax.block_until_ready(out["pred_boxes"])
    jax.block_until_ready(out["refined_vote_feature"])

    assert out["pred_logits"].shape == (B, N, N_CLS)
    assert out["pred_boxes"].shape == (B, N, N_BOX)
    assert out["refined_vote_feature"].shape == (N, HIDDEN)

    # numerical sanity check against a pure-JAX reference with identical bf16 rounding
    hs_ref, logits_ref, boxes_ref = _reference_forward(model, features)
    assert jnp.allclose(out["pred_logits"], logits_ref, atol=2e-2, rtol=2e-2)
    assert jnp.allclose(out["pred_boxes"], boxes_ref, atol=2e-2, rtol=2e-2)
    assert jnp.allclose(out["refined_vote_feature"], hs_ref[-1], atol=2e-2, rtol=2e-2)

    print("KERNEL_OK")
</pallas_src>

<mosaic_0001>
module attributes {stable_mosaic.version = 11 : i64} {
  func.func @_detr3d_enc_kernel(%arg0: i32, %arg1: i32, %arg2: memref<1x16x8xf32, #tpu.memory_space<vmem>>, %arg3: memref<1x16x8xf32, #tpu.memory_space<vmem>>, %arg4: memref<8x32xbf16, #tpu.memory_space<vmem>>, %arg5: memref<32x32xbf16, #tpu.memory_space<vmem>>, %arg6: memref<32x64xbf16, #tpu.memory_space<vmem>>, %arg7: memref<32x32xbf16, #tpu.memory_space<vmem>>, %arg8: memref<32x64xbf16, #tpu.memory_space<vmem>>, %arg9: memref<64x32xbf16, #tpu.memory_space<vmem>>, %arg10: memref<32x128xbf16, #tpu.memory_space<vmem>>, %arg11: memref<32x32xbf16, #tpu.memory_space<vmem>>, %arg12: memref<32x32xbf16, #tpu.memory_space<vmem>>, %arg13: memref<32x128xbf16, #tpu.memory_space<vmem>>, %arg14: memref<14x128xf32, #tpu.memory_space<vmem>>, %arg15: memref<1x16x32xf32, #tpu.memory_space<vmem>>, %arg16: memref<1x16x128xf32, #tpu.memory_space<vmem>>, %arg17: memref<1x16x128xf32, #tpu.memory_space<vmem>>) attributes {dimension_semantics = [#tpu.dimension_semantics<parallel>, #tpu.dimension_semantics<parallel>], iteration_bounds = array<i64: 2, 1>, scalar_prefetch = 0 : i64, scratch_operands = 0 : i64, tpu.core_type = #tpu.core_type<tc>, window_params = [{transform_indices = @transform_0, window_bounds = array<i64: 1, 16, 8>}, {transform_indices = @transform_1, window_bounds = array<i64: 1, 16, 8>}, {pipeline_mode = #tpu.pipeline_mode<synchronous>, transform_indices = @transform_2, window_bounds = array<i64: 8, 32>}, {pipeline_mode = #tpu.pipeline_mode<synchronous>, transform_indices = @transform_3, window_bounds = array<i64: 32, 32>}, {pipeline_mode = #tpu.pipeline_mode<synchronous>, transform_indices = @transform_4, window_bounds = array<i64: 32, 64>}, {pipeline_mode = #tpu.pipeline_mode<synchronous>, transform_indices = @transform_5, window_bounds = array<i64: 32, 32>}, {pipeline_mode = #tpu.pipeline_mode<synchronous>, transform_indices = @transform_6, window_bounds = array<i64: 32, 64>}, {pipeline_mode = #tpu.pipeline_mode<synchronous>, transform_indices = @transform_7, window_bounds = array<i64: 64, 32>}, {pipeline_mode = #tpu.pipeline_mode<synchronous>, transform_indices = @transform_8, window_bounds = array<i64: 32, 128>}, {pipeline_mode = #tpu.pipeline_mode<synchronous>, transform_indices = @transform_9, window_bounds = array<i64: 32, 32>}, {pipeline_mode = #tpu.pipeline_mode<synchronous>, transform_indices = @transform_10, window_bounds = array<i64: 32, 32>}, {pipeline_mode = #tpu.pipeline_mode<synchronous>, transform_indices = @transform_11, window_bounds = array<i64: 32, 128>}, {pipeline_mode = #tpu.pipeline_mode<synchronous>, transform_indices = @transform_12, window_bounds = array<i64: 14, 128>}, {transform_indices = @transform_13, window_bounds = array<i64: 1, 16, 32>}, {transform_indices = @transform_14, window_bounds = array<i64: 1, 16, 128>}, {transform_indices = @transform_15, window_bounds = array<i64: 1, 16, 128>}]} {
    %c0 = arith.constant 0 : index
    %c0_0 = arith.constant 0 : index
    %0 = vector.load %arg14[%c0, %c0_0] : memref<14x128xf32, #tpu.memory_space<vmem>>, vector<14x128xf32>
    %1 = vector.extract_strided_slice %0 {offsets = [0, 0], sizes = [1, 32], strides = [1, 1]} : vector<14x128xf32> to vector<1x32xf32>
    %2 = vector.extract_strided_slice %0 {offsets = [1, 0], sizes = [1, 32], strides = [1, 1]} : vector<14x128xf32> to vector<1x32xf32>
    %3 = vector.extract_strided_slice %0 {offsets = [2, 0], sizes = [1, 64], strides = [1, 1]} : vector<14x128xf32> to vector<1x64xf32>
    %4 = vector.extract_strided_slice %0 {offsets = [3, 0], sizes = [1, 32], strides = [1, 1]} : vector<14x128xf32> to vector<1x32xf32>
    %5 = vector.extract_strided_slice %0 {offsets = [4, 0], sizes = [1, 32], strides = [1, 1]} : vector<14x128xf32> to vector<1x32xf32>
    %6 = vector.extract_strided_slice %0 {offsets = [5, 0], sizes = [1, 32], strides = [1, 1]} : vector<14x128xf32> to vector<1x32xf32>
    %7 = vector.extract_strided_slice %0 {offsets = [6, 0], sizes = [1, 64], strides = [1, 1]} : vector<14x128xf32> to vector<1x64xf32>
    %8 = vector.extract_strided_slice %0 {offsets = [7, 0], sizes = [1, 32], strides = [1, 1]} : vector<14x128xf32> to vector<1x32xf32>
    %9 = vector.extract_strided_slice %0 {offsets = [8, 0], sizes = [1, 32], strides = [1, 1]} : vector<14x128xf32> to vector<1x32xf32>
    %10 = vector.extract_strided_slice %0 {offsets = [9, 0], sizes = [1, 32], strides = [1, 1]} : vector<14x128xf32> to vector<1x32xf32>
    %11 = vector.extract_strided_slice %0 {offsets = [10, 0], sizes = [1, 128], strides = [1, 1]} : vector<14x128xf32> to vector<1x128xf32>
    %12 = vector.extract_strided_slice %0 {offsets = [11, 0], sizes = [1, 32], strides = [1, 1]} : vector<14x128xf32> to vector<1x32xf32>
    %13 = vector.extract_strided_slice %0 {offsets = [12, 0], sizes = [1, 32], strides = [1, 1]} : vector<14x128xf32> to vector<1x32xf32>
    %14 = vector.extract_strided_slice %0 {offsets = [13, 0], sizes = [1, 128], strides = [1, 1]} : vector<14x128xf32> to vector<1x128xf32>
    %c0_1 = arith.constant 0 : index
    %c0_2 = arith.constant 0 : index
    %c0_3 = arith.constant 0 : index
    %15 = vector.load %arg2[%c0_1, %c0_2, %c0_3] : memref<1x16x8xf32, #tpu.memory_space<vmem>>, vector<1x16x8xf32>
    %16 = vector.shape_cast %15 : vector<1x16x8xf32> to vector<16x8xf32>
    %17 = arith.truncf %16 : vector<16x8xf32> to vector<16x8xbf16>
    %c0_4 = arith.constant 0 : index
    %c0_5 = arith.constant 0 : index
    %c0_6 = arith.constant 0 : index
    %18 = vector.load %arg3[%c0_4, %c0_5, %c0_6] : memref<1x16x8xf32, #tpu.memory_space<vmem>>, vector<1x16x8xf32>
    %19 = vector.shape_cast %18 : vector<1x16x8xf32> to vector<16x8xf32>
    %20 = arith.truncf %19 : vector<16x8xf32> to vector<16x8xbf16>
    %c0_7 = arith.constant 0 : index
    %c0_8 = arith.constant 0 : index
    %21 = vector.load %arg4[%c0_7, %c0_8] : memref<8x32xbf16, #tpu.memory_space<vmem>>, vector<8x32xbf16>
    %cst = arith.constant dense<0.000000e+00> : vector<16x32xf32>
    %22 = tpu.matmul %17, %21, %cst {dimension_numbers = #tpu.dot_dimension_numbers<[1], [0], [0], [1], [0, 0, 1, 1], [], []>} : vector<16x8xbf16>, vector<8x32xbf16>, vector<16x32xf32> -> vector<16x32xf32>
    %23 = vector.broadcast %1 : vector<1x32xf32> to vector<16x32xf32>
    %24 = arith.addf %22, %23 : vector<16x32xf32>
    %c0_9 = arith.constant 0 : index
    %c0_10 = arith.constant 0 : index
    %25 = vector.load %arg4[%c0_9, %c0_10] : memref<8x32xbf16, #tpu.memory_space<vmem>>, vector<8x32xbf16>
    %cst_11 = arith.constant dense<0.000000e+00> : vector<16x32xf32>
    %26 = tpu.matmul %20, %25, %cst_11 {dimension_numbers = #tpu.dot_dimension_numbers<[1], [0], [0], [1], [0, 0, 1, 1], [], []>} : vector<16x8xbf16>, vector<8x32xbf16>, vector<16x32xf32> -> vector<16x32xf32>
    %27 = vector.broadcast %1 : vector<1x32xf32> to vector<16x32xf32>
    %28 = arith.addf %26, %27 : vector<16x32xf32>
    %29 = arith.truncf %24 : vector<16x32xf32> to vector<16x32xbf16>
    %c0_12 = arith.constant 0 : index
    %c0_13 = arith.constant 0 : index
    %30 = vector.load %arg5[%c0_12, %c0_13] : memref<32x32xbf16, #tpu.memory_space<vmem>>, vector<32x32xbf16>
    %cst_14 = arith.constant dense<0.000000e+00> : vector<16x32xf32>
    %31 = tpu.matmul %29, %30, %cst_14 {dimension_numbers = #tpu.dot_dimension_numbers<[1], [0], [0], [1], [0, 0, 1, 1], [], []>} : vector<16x32xbf16>, vector<32x32xbf16>, vector<16x32xf32> -> vector<16x32xf32>
    %32 = vector.broadcast %2 : vector<1x32xf32> to vector<16x32xf32>
    %33 = arith.addf %31, %32 : vector<16x32xf32>
    %cst_15 = arith.constant 0.353553385 : f32
    %34 = vector.broadcast %cst_15 : f32 to vector<16x32xf32>
    %35 = arith.mulf %33, %34 : vector<16x32xf32>
    %36 = arith.truncf %28 : vector<16x32xf32> to vector<16x32xbf16>
    %c0_16 = arith.constant 0 : index
    %c0_17 = arith.constant 0 : index
    %37 = vector.load %arg6[%c0_16, %c0_17] : memref<32x64xbf16, #tpu.memory_space<vmem>>, vector<32x64xbf16>
    %cst_18 = arith.constant dense<0.000000e+00> : vector<16x64xf32>
    %38 = tpu.matmul %36, %37, %cst_18 {dimension_numbers = #tpu.dot_dimension_numbers<[1], [0], [0], [1], [0, 0, 1, 1], [], []>} : vector<16x32xbf16>, vector<32x64xbf16>, vector<16x64xf32> -> vector<16x64xf32>
    %39 = vector.broadcast %3 : vector<1x64xf32> to vector<16x64xf32>
    %40 = arith.addf %38, %39 : vector<16x64xf32>
    %41 = vector.extract_strided_slice %40 {offsets = [0, 0], sizes = [16, 32], strides = [1, 1]} : vector<16x64xf32> to vector<16x32xf32>
    %42 = vector.extract_strided_slice %40 {offsets = [0, 32], sizes = [16, 32], strides = [1, 1]} : vector<16x64xf32> to vector<16x32xf32>
    %c0_19 = arith.constant 0 : index
    %c0_20 = arith.constant 0 : index
    %43 = vector.load %arg7[%c0_19, %c0_20] : memref<32x32xbf16, #tpu.memory_space<vmem>>, vector<32x32xbf16>
    %44 = vector.broadcast %4 : vector<1x32xf32> to vector<16x32xf32>
    %45 = arith.addf %24, %44 : vector<16x32xf32>
    %46 = vector.extract_strided_slice %35 {offsets = [0, 0], sizes = [16, 8], strides = [1, 1]} : vector<16x32xf32> to vector<16x8xf32>
    %47 = arith.truncf %46 : vector<16x8xf32> to vector<16x8xbf16>
    %48 = vector.extract_strided_slice %41 {offsets = [0, 0], sizes = [16, 8], strides = [1, 1]} : vector<16x32xf32> to vector<16x8xf32>
    %49 = arith.truncf %48 : vector<16x8xf32> to vector<16x8xbf16>
    %50 = vector.extract_strided_slice %42 {offsets = [0, 0], sizes = [16, 8], strides = [1, 1]} : vector<16x32xf32> to vector<16x8xf32>
    %51 = arith.truncf %50 : vector<16x8xf32> to vector<16x8xbf16>
    %cst_21 = arith.constant dense<0.000000e+00> : vector<16x16xf32>
    %52 = tpu.matmul %47, %49, %cst_21 {dimension_numbers = #tpu.dot_dimension_numbers<[1], [1], [0], [0], [0, 0, 1, 0], [], []>} : vector<16x8xbf16>, vector<16x8xbf16>, vector<16x16xf32> -> vector<16x16xf32>
    %cst_22 = arith.constant dense<0xFF800000> : vector<16xf32>
    %53 = vector.multi_reduction <maximumf>, %52, %cst_22 [1] : vector<16x16xf32> to vector<16xf32>
    %54 = vector.shape_cast %53 : vector<16xf32> to vector<16x1xf32>
    %55 = vector.broadcast %54 : vector<16x1xf32> to vector<16x16xf32>
    %56 = arith.subf %52, %55 : vector<16x16xf32>
    %57 = math.exp %56 : vector<16x16xf32>
    %cst_23 = arith.constant dense<0.000000e+00> : vector<16xf32>
    %58 = vector.multi_reduction <add>, %57, %cst_23 [1] : vector<16x16xf32> to vector<16xf32>
    %59 = vector.shape_cast %58 : vector<16xf32> to vector<16x1xf32>
    %60 = tpu.reciprocal %59 : vector<16x1xf32> -> vector<16x1xf32>
    %61 = vector.broadcast %60 : vector<16x1xf32> to vector<16x16xf32>
    %62 = arith.mulf %57, %61 : vector<16x16xf32>
    %63 = arith.truncf %62 : vector<16x16xf32> to vector<16x16xbf16>
    %cst_24 = arith.constant dense<0.000000e+00> : vector<16x8xf32>
    %64 = tpu.matmul %63, %51, %cst_24 {dimension_numbers = #tpu.dot_dimension_numbers<[1], [0], [0], [1], [0, 0, 1, 1], [], []>} : vector<16x16xbf16>, vector<16x8xbf16>, vector<16x8xf32> -> vector<16x8xf32>
    %65 = arith.truncf %64 : vector<16x8xf32> to vector<16x8xbf16>
    %66 = vector.extract_strided_slice %43 {offsets = [0, 0], sizes = [8, 32], strides = [1, 1]} : vector<32x32xbf16> to vector<8x32xbf16>
    %cst_25 = arith.constant dense<0.000000e+00> : vector<16x32xf32>
    %67 = tpu.matmul %65, %66, %cst_25 {dimension_numbers = #tpu.dot_dimension_numbers<[1], [0], [0], [1], [0, 0, 1, 1], [], []>} : vector<16x8xbf16>, vector<8x32xbf16>, vector<16x32xf32> -> vector<16x32xf32>
    %68 = arith.addf %45, %67 : vector<16x32xf32>
    %69 = vector.extract_strided_slice %35 {offsets = [0, 8], sizes = [16, 8], strides = [1, 1]} : vector<16x32xf32> to vector<16x8xf32>
    %70 = arith.truncf %69 : vector<16x8xf32> to vector<16x8xbf16>
    %71 = vector.extract_strided_slice %41 {offsets = [0, 8], sizes = [16, 8], strides = [1, 1]} : vector<16x32xf32> to vector<16x8xf32>
    %72 = arith.truncf %71 : vector<16x8xf32> to vector<16x8xbf16>
    %73 = vector.extract_strided_slice %42 {offsets = [0, 8], sizes = [16, 8], strides = [1, 1]} : vector<16x32xf32> to vector<16x8xf32>
    %74 = arith.truncf %73 : vector<16x8xf32> to vector<16x8xbf16>
    %cst_26 = arith.constant dense<0.000000e+00> : vector<16x16xf32>
    %75 = tpu.matmul %70, %72, %cst_26 {dimension_numbers = #tpu.dot_dimension_numbers<[1], [1], [0], [0], [0, 0, 1, 0], [], []>} : vector<16x8xbf16>, vector<16x8xbf16>, vector<16x16xf32> -> vector<16x16xf32>
    %cst_27 = arith.constant dense<0xFF800000> : vector<16xf32>
    %76 = vector.multi_reduction <maximumf>, %75, %cst_27 [1] : vector<16x16xf32> to vector<16xf32>
    %77 = vector.shape_cast %76 : vector<16xf32> to vector<16x1xf32>
    %78 = vector.broadcast %77 : vector<16x1xf32> to vector<16x16xf32>
    %79 = arith.subf %75, %78 : vector<16x16xf32>
    %80 = math.exp %79 : vector<16x16xf32>
    %cst_28 = arith.constant dense<0.000000e+00> : vector<16xf32>
    %81 = vector.multi_reduction <add>, %80, %cst_28 [1] : vector<16x16xf32> to vector<16xf32>
    %82 = vector.shape_cast %81 : vector<16xf32> to vector<16x1xf32>
    %83 = tpu.reciprocal %82 : vector<16x1xf32> -> vector<16x1xf32>
    %84 = vector.broadcast %83 : vector<16x1xf32> to vector<16x16xf32>
    %85 = arith.mulf %80, %84 : vector<16x16xf32>
    %86 = arith.truncf %85 : vector<16x16xf32> to vector<16x16xbf16>
    %cst_29 = arith.constant dense<0.000000e+00> : vector<16x8xf32>
    %87 = tpu.matmul %86, %74, %cst_29 {dimension_numbers = #tpu.dot_dimension_numbers<[1], [0], [0], [1], [0, 0, 1, 1], [], []>} : vector<16x16xbf16>, vector<16x8xbf16>, vector<16x8xf32> -> vector<16x8xf32>
    %88 = arith.truncf %87 : vector<16x8xf32> to vector<16x8xbf16>
    %89 = vector.extract_strided_slice %43 {offsets = [8, 0], sizes = [8, 32], strides = [1, 1]} : vector<32x32xbf16> to vector<8x32xbf16>
    %cst_30 = arith.constant dense<0.000000e+00> : vector<16x32xf32>
    %90 = tpu.matmul %88, %89, %cst_30 {dimension_numbers = #tpu.dot_dimension_numbers<[1], [0], [0], [1], [0, 0, 1, 1], [], []>} : vector<16x8xbf16>, vector<8x32xbf16>, vector<16x32xf32> -> vector<16x32xf32>
    %91 = arith.addf %68, %90 : vector<16x32xf32>
    %92 = vector.extract_strided_slice %35 {offsets = [0, 16], sizes = [16, 8], strides = [1, 1]} : vector<16x32xf32> to vector<16x8xf32>
    %93 = arith.truncf %92 : vector<16x8xf32> to vector<16x8xbf16>
    %94 = vector.extract_strided_slice %41 {offsets = [0, 16], sizes = [16, 8], strides = [1, 1]} : vector<16x32xf32> to vector<16x8xf32>
    %95 = arith.truncf %94 : vector<16x8xf32> to vector<16x8xbf16>
    %96 = vector.extract_strided_slice %42 {offsets = [0, 16], sizes = [16, 8], strides = [1, 1]} : vector<16x32xf32> to vector<16x8xf32>
    %97 = arith.truncf %96 : vector<16x8xf32> to vector<16x8xbf16>
    %cst_31 = arith.constant dense<0.000000e+00> : vector<16x16xf32>
    %98 = tpu.matmul %93, %95, %cst_31 {dimension_numbers = #tpu.dot_dimension_numbers<[1], [1], [0], [0], [0, 0, 1, 0], [], []>} : vector<16x8xbf16>, vector<16x8xbf16>, vector<16x16xf32> -> vector<16x16xf32>
    %cst_32 = arith.constant dense<0xFF800000> : vector<16xf32>
    %99 = vector.multi_reduction <maximumf>, %98, %cst_32 [1] : vector<16x16xf32> to vector<16xf32>
    %100 = vector.shape_cast %99 : vector<16xf32> to vector<16x1xf32>
    %101 = vector.broadcast %100 : vector<16x1xf32> to vector<16x16xf32>
    %102 = arith.subf %98, %101 : vector<16x16xf32>
    %103 = math.exp %102 : vector<16x16xf32>
    %cst_33 = arith.constant dense<0.000000e+00> : vector<16xf32>
    %104 = vector.multi_reduction <add>, %103, %cst_33 [1] : vector<16x16xf32> to vector<16xf32>
    %105 = vector.shape_cast %104 : vector<16xf32> to vector<16x1xf32>
    %106 = tpu.reciprocal %105 : vector<16x1xf32> -> vector<16x1xf32>
    %107 = vector.broadcast %106 : vector<16x1xf32> to vector<16x16xf32>
    %108 = arith.mulf %103, %107 : vector<16x16xf32>
    %109 = arith.truncf %108 : vector<16x16xf32> to vector<16x16xbf16>
    %cst_34 = arith.constant dense<0.000000e+00> : vector<16x8xf32>
    %110 = tpu.matmul %109, %97, %cst_34 {dimension_numbers = #tpu.dot_dimension_numbers<[1], [0], [0], [1], [0, 0, 1, 1], [], []>} : vector<16x16xbf16>, vector<16x8xbf16>, vector<16x8xf32> -> vector<16x8xf32>
    %111 = arith.truncf %110 : vector<16x8xf32> to vector<16x8xbf16>
    %112 = vector.extract_strided_slice %43 {offsets = [16, 0], sizes = [8, 32], strides = [1, 1]} : vector<32x32xbf16> to vector<8x32xbf16>
    %cst_35 = arith.constant dense<0.000000e+00> : vector<16x32xf32>
    %113 = tpu.matmul %111, %112, %cst_35 {dimension_numbers = #tpu.dot_dimension_numbers<[1], [0], [0], [1], [0, 0, 1, 1], [], []>} : vector<16x8xbf16>, vector<8x32xbf16>, vector<16x32xf32> -> vector<16x32xf32>
    %114 = arith.addf %91, %113 : vector<16x32xf32>
    %115 = vector.extract_strided_slice %35 {offsets = [0, 24], sizes = [16, 8], strides = [1, 1]} : vector<16x32xf32> to vector<16x8xf32>
    %116 = arith.truncf %115 : vector<16x8xf32> to vector<16x8xbf16>
    %117 = vector.extract_strided_slice %41 {offsets = [0, 24], sizes = [16, 8], strides = [1, 1]} : vector<16x32xf32> to vector<16x8xf32>
    %118 = arith.truncf %117 : vector<16x8xf32> to vector<16x8xbf16>
    %119 = vector.extract_strided_slice %42 {offsets = [0, 24], sizes = [16, 8], strides = [1, 1]} : vector<16x32xf32> to vector<16x8xf32>
    %120 = arith.truncf %119 : vector<16x8xf32> to vector<16x8xbf16>
    %cst_36 = arith.constant dense<0.000000e+00> : vector<16x16xf32>
    %121 = tpu.matmul %116, %118, %cst_36 {dimension_numbers = #tpu.dot_dimension_numbers<[1], [1], [0], [0], [0, 0, 1, 0], [], []>} : vector<16x8xbf16>, vector<16x8xbf16>, vector<16x16xf32> -> vector<16x16xf32>
    %cst_37 = arith.constant dense<0xFF800000> : vector<16xf32>
    %122 = vector.multi_reduction <maximumf>, %121, %cst_37 [1] : vector<16x16xf32> to vector<16xf32>
    %123 = vector.shape_cast %122 : vector<16xf32> to vector<16x1xf32>
    %124 = vector.broadcast %123 : vector<16x1xf32> to vector<16x16xf32>
    %125 = arith.subf %121, %124 : vector<16x16xf32>
    %126 = math.exp %125 : vector<16x16xf32>
    %cst_38 = arith.constant dense<0.000000e+00> : vector<16xf32>
    %127 = vector.multi_reduction <add>, %126, %cst_38 [1] : vector<16x16xf32> to vector<16xf32>
    %128 = vector.shape_cast %127 : vector<16xf32> to vector<16x1xf32>
    %129 = tpu.reciprocal %128 : vector<16x1xf32> -> vector<16x1xf32>
    %130 = vector.broadcast %129 : vector<16x1xf32> to vector<16x16xf32>
    %131 = arith.mulf %126, %130 : vector<16x16xf32>
    %132 = arith.truncf %131 : vector<16x16xf32> to vector<16x16xbf16>
    %cst_39 = arith.constant dense<0.000000e+00> : vector<16x8xf32>
    %133 = tpu.matmul %132, %120, %cst_39 {dimension_numbers = #tpu.dot_dimension_numbers<[1], [0], [0], [1], [0, 0, 1, 1], [], []>} : vector<16x16xbf16>, vector<16x8xbf16>, vector<16x8xf32> -> vector<16x8xf32>
    %134 = arith.truncf %133 : vector<16x8xf32> to vector<16x8xbf16>
    %135 = vector.extract_strided_slice %43 {offsets = [24, 0], sizes = [8, 32], strides = [1, 1]} : vector<32x32xbf16> to vector<8x32xbf16>
    %cst_40 = arith.constant dense<0.000000e+00> : vector<16x32xf32>
    %136 = tpu.matmul %134, %135, %cst_40 {dimension_numbers = #tpu.dot_dimension_numbers<[1], [0], [0], [1], [0, 0, 1, 1], [], []>} : vector<16x8xbf16>, vector<8x32xbf16>, vector<16x32xf32> -> vector<16x32xf32>
    %137 = arith.addf %114, %136 : vector<16x32xf32>
    %cst_41 = arith.constant dense<0.000000e+00> : vector<16xf32>
    %138 = vector.multi_reduction <add>, %137, %cst_41 [1] : vector<16x32xf32> to vector<16xf32>
    %139 = vector.shape_cast %138 : vector<16xf32> to vector<16x1xf32>
    %cst_42 = arith.constant 3.200000e+01 : f32
    %140 = vector.broadcast %cst_42 : f32 to vector<16x1xf32>
    %141 = arith.divf %139, %140 : vector<16x1xf32>
    %142 = vector.broadcast %141 : vector<16x1xf32> to vector<16x32xf32>
    %143 = arith.subf %137, %142 : vector<16x32xf32>
    %144 = vector.broadcast %141 : vector<16x1xf32> to vector<16x32xf32>
    %145 = arith.subf %137, %144 : vector<16x32xf32>
    %146 = arith.mulf %143, %145 : vector<16x32xf32>
    %cst_43 = arith.constant dense<0.000000e+00> : vector<16xf32>
    %147 = vector.multi_reduction <add>, %146, %cst_43 [1] : vector<16x32xf32> to vector<16xf32>
    %148 = vector.shape_cast %147 : vector<16xf32> to vector<16x1xf32>
    %cst_44 = arith.constant 3.200000e+01 : f32
    %149 = vector.broadcast %cst_44 : f32 to vector<16x1xf32>
    %150 = arith.divf %148, %149 : vector<16x1xf32>
    %151 = vector.broadcast %141 : vector<16x1xf32> to vector<16x32xf32>
    %152 = arith.subf %137, %151 : vector<16x32xf32>
    %cst_45 = arith.constant 9.99999974E-6 : f32
    %153 = vector.broadcast %cst_45 : f32 to vector<16x1xf32>
    %154 = arith.addf %150, %153 : vector<16x1xf32>
    %155 = math.rsqrt %154 : vector<16x1xf32>
    %156 = vector.broadcast %155 : vector<16x1xf32> to vector<16x32xf32>
    %157 = arith.mulf %152, %156 : vector<16x32xf32>
    %158 = vector.broadcast %5 : vector<1x32xf32> to vector<16x32xf32>
    %159 = arith.mulf %157, %158 : vector<16x32xf32>
    %160 = vector.broadcast %6 : vector<1x32xf32> to vector<16x32xf32>
    %161 = arith.addf %159, %160 : vector<16x32xf32>
    %162 = arith.truncf %161 : vector<16x32xf32> to vector<16x32xbf16>
    %c0_46 = arith.constant 0 : index
    %c0_47 = arith.constant 0 : index
    %163 = vector.load %arg8[%c0_46, %c0_47] : memref<32x64xbf16, #tpu.memory_space<vmem>>, vector<32x64xbf16>
    %cst_48 = arith.constant dense<0.000000e+00> : vector<16x64xf32>
    %164 = tpu.matmul %162, %163, %cst_48 {dimension_numbers = #tpu.dot_dimension_numbers<[1], [0], [0], [1], [0, 0, 1, 1], [], []>} : vector<16x32xbf16>, vector<32x64xbf16>, vector<16x64xf32> -> vector<16x64xf32>
    %165 = vector.broadcast %7 : vector<1x64xf32> to vector<16x64xf32>
    %166 = arith.addf %164, %165 : vector<16x64xf32>
    %cst_49 = arith.constant 0.000000e+00 : f32
    %167 = vector.broadcast %cst_49 : f32 to vector<16x64xf32>
    %168 = arith.maximumf %166, %167 : vector<16x64xf32>
    %169 = arith.truncf %168 : vector<16x64xf32> to vector<16x64xbf16>
    %c0_50 = arith.constant 0 : index
    %c0_51 = arith.constant 0 : index
    %170 = vector.load %arg9[%c0_50, %c0_51] : memref<64x32xbf16, #tpu.memory_space<vmem>>, vector<64x32xbf16>
    %cst_52 = arith.constant dense<0.000000e+00> : vector<16x32xf32>
    %171 = tpu.matmul %169, %170, %cst_52 {dimension_numbers = #tpu.dot_dimension_numbers<[1], [0], [0], [1], [0, 0, 1, 1], [], []>} : vector<16x64xbf16>, vector<64x32xbf16>, vector<16x32xf32> -> vector<16x32xf32>
    %172 = vector.broadcast %8 : vector<1x32xf32> to vector<16x32xf32>
    %173 = arith.addf %171, %172 : vector<16x32xf32>
    %174 = arith.addf %161, %173 : vector<16x32xf32>
    %cst_53 = arith.constant dense<0.000000e+00> : vector<16xf32>
    %175 = vector.multi_reduction <add>, %174, %cst_53 [1] : vector<16x32xf32> to vector<16xf32>
    %176 = vector.shape_cast %175 : vector<16xf32> to vector<16x1xf32>
    %cst_54 = arith.constant 3.200000e+01 : f32
    %177 = vector.broadcast %cst_54 : f32 to vector<16x1xf32>
    %178 = arith.divf %176, %177 : vector<16x1xf32>
    %179 = vector.broadcast %178 : vector<16x1xf32> to vector<16x32xf32>
    %180 = arith.subf %174, %179 : vector<16x32xf32>
    %181 = vector.broadcast %178 : vector<16x1xf32> to vector<16x32xf32>
    %182 = arith.subf %174, %181 : vector<16x32xf32>
    %183 = arith.mulf %180, %182 : vector<16x32xf32>
    %cst_55 = arith.constant dense<0.000000e+00> : vector<16xf32>
    %184 = vector.multi_reduction <add>, %183, %cst_55 [1] : vector<16x32xf32> to vector<16xf32>
    %185 = vector.shape_cast %184 : vector<16xf32> to vector<16x1xf32>
    %cst_56 = arith.constant 3.200000e+01 : f32
    %186 = vector.broadcast %cst_56 : f32 to vector<16x1xf32>
    %187 = arith.divf %185, %186 : vector<16x1xf32>
    %188 = vector.broadcast %178 : vector<16x1xf32> to vector<16x32xf32>
    %189 = arith.subf %174, %188 : vector<16x32xf32>
    %cst_57 = arith.constant 9.99999974E-6 : f32
    %190 = vector.broadcast %cst_57 : f32 to vector<16x1xf32>
    %191 = arith.addf %187, %190 : vector<16x1xf32>
    %192 = math.rsqrt %191 : vector<16x1xf32>
    %193 = vector.broadcast %192 : vector<16x1xf32> to vector<16x32xf32>
    %194 = arith.mulf %189, %193 : vector<16x32xf32>
    %195 = vector.broadcast %9 : vector<1x32xf32> to vector<16x32xf32>
    %196 = arith.mulf %194, %195 : vector<16x32xf32>
    %197 = vector.broadcast %10 : vector<1x32xf32> to vector<16x32xf32>
    %198 = arith.addf %196, %197 : vector<16x32xf32>
    %c0_58 = arith.constant 0 : index
    %c0_59 = arith.constant 0 : index
    %c0_60 = arith.constant 0 : index
    %199 = vector.load %arg15[%c0_58, %c0_59, %c0_60] : memref<1x16x32xf32, #tpu.memory_space<vmem>>, vector<1x16x32xf32>
    %200 = vector.shape_cast %199 : vector<1x16x32xf32> to vector<16x32xf32>
    %201 = vector.shape_cast %198 : vector<16x32xf32> to vector<1x16x32xf32>
    tpu.vector_store %arg15[%c0_58, %c0_59, %c0_60], %201 {strides = array<i32>} : memref<1x16x32xf32, #tpu.memory_space<vmem>>, vector<1x16x32xf32>,
    %202 = arith.truncf %198 : vector<16x32xf32> to vector<16x32xbf16>
    %c0_61 = arith.constant 0 : index
    %c0_62 = arith.constant 0 : index
    %203 = vector.load %arg10[%c0_61, %c0_62] : memref<32x128xbf16, #tpu.memory_space<vmem>>, vector<32x128xbf16>
    %cst_63 = arith.constant dense<0.000000e+00> : vector<16x128xf32>
    %204 = tpu.matmul %202, %203, %cst_63 {dimension_numbers = #tpu.dot_dimension_numbers<[1], [0], [0], [1], [0, 0, 1, 1], [], []>} : vector<16x32xbf16>, vector<32x128xbf16>, vector<16x128xf32> -> vector<16x128xf32>
    %205 = vector.broadcast %11 : vector<1x128xf32> to vector<16x128xf32>
    %206 = arith.addf %204, %205 : vector<16x128xf32>
    %c0_64 = arith.constant 0 : index
    %c0_65 = arith.constant 0 : index
    %c0_66 = arith.constant 0 : index
    %207 = vector.load %arg16[%c0_64, %c0_65, %c0_66] : memref<1x16x128xf32, #tpu.memory_space<vmem>>, vector<1x16x128xf32>
    %208 = vector.shape_cast %207 : vector<1x16x128xf32> to vector<16x128xf32>
    %209 = vector.shape_cast %206 : vector<16x128xf32> to vector<1x16x128xf32>
    tpu.vector_store %arg16[%c0_64, %c0_65, %c0_66], %209 {strides = array<i32>} : memref<1x16x128xf32, #tpu.memory_space<vmem>>, vector<1x16x128xf32>,
    %c0_67 = arith.constant 0 : index
    %c0_68 = arith.constant 0 : index
    %210 = vector.load %arg11[%c0_67, %c0_68] : memref<32x32xbf16, #tpu.memory_space<vmem>>, vector<32x32xbf16>
    %cst_69 = arith.constant dense<0.000000e+00> : vector<16x32xf32>
    %211 = tpu.matmul %202, %210, %cst_69 {dimension_numbers = #tpu.dot_dimension_numbers<[1], [0], [0], [1], [0, 0, 1, 1], [], []>} : vector<16x32xbf16>, vector<32x32xbf16>, vector<16x32xf32> -> vector<16x32xf32>
    %212 = vector.broadcast %12 : vector<1x32xf32> to vector<16x32xf32>
    %213 = arith.addf %211, %212 : vector<16x32xf32>
    %cst_70 = arith.constant 0.000000e+00 : f32
    %214 = vector.broadcast %cst_70 : f32 to vector<16x32xf32>
    %215 = arith.maximumf %213, %214 : vector<16x32xf32>
    %216 = arith.truncf %215 : vector<16x32xf32> to vector<16x32xbf16>
    %c0_71 = arith.constant 0 : index
    %c0_72 = arith.constant 0 : index
    %217 = vector.load %arg12[%c0_71, %c0_72] : memref<32x32xbf16, #tpu.memory_space<vmem>>, vector<32x32xbf16>
    %cst_73 = arith.constant dense<0.000000e+00> : vector<16x32xf32>
    %218 = tpu.matmul %216, %217, %cst_73 {dimension_numbers = #tpu.dot_dimension_numbers<[1], [0], [0], [1], [0, 0, 1, 1], [], []>} : vector<16x32xbf16>, vector<32x32xbf16>, vector<16x32xf32> -> vector<16x32xf32>
    %219 = vector.broadcast %13 : vector<1x32xf32> to vector<16x32xf32>
    %220 = arith.addf %218, %219 : vector<16x32xf32>
    %cst_74 = arith.constant 0.000000e+00 : f32
    %221 = vector.broadcast %cst_74 : f32 to vector<16x32xf32>
    %222 = arith.maximumf %220, %221 : vector<16x32xf32>
    %223 = arith.truncf %222 : vector<16x32xf32> to vector<16x32xbf16>
    %c0_75 = arith.constant 0 : index
    %c0_76 = arith.constant 0 : index
    %224 = vector.load %arg13[%c0_75, %c0_76] : memref<32x128xbf16, #tpu.memory_space<vmem>>, vector<32x128xbf16>
    %cst_77 = arith.constant dense<0.000000e+00> : vector<16x128xf32>
    %225 = tpu.matmul %223, %224, %cst_77 {dimension_numbers = #tpu.dot_dimension_numbers<[1], [0], [0], [1], [0, 0, 1, 1], [], []>} : vector<16x32xbf16>, vector<32x128xbf16>, vector<16x128xf32> -> vector<16x128xf32>
    %226 = vector.broadcast %14 : vector<1x128xf32> to vector<16x128xf32>
    %227 = arith.addf %225, %226 : vector<16x128xf32>
    %c0_78 = arith.constant 0 : index
    %c0_79 = arith.constant 0 : index
    %c0_80 = arith.constant 0 : index
    %228 = vector.load %arg17[%c0_78, %c0_79, %c0_80] : memref<1x16x128xf32, #tpu.memory_space<vmem>>, vector<1x16x128xf32>
    %229 = vector.shape_cast %228 : vector<1x16x128xf32> to vector<16x128xf32>
    %230 = vector.shape_cast %227 : vector<16x128xf32> to vector<1x16x128xf32>
    tpu.vector_store %arg17[%c0_78, %c0_79, %c0_80], %230 {strides = array<i32>} : memref<1x16x128xf32, #tpu.memory_space<vmem>>, vector<1x16x128xf32>,
    return
  }
  func.func @transform_0(%arg0: i32, %arg1: i32) -> (i32, i32, i32) {
    %c0_i32 = arith.constant 0 : i32
    %c0_i32_0 = arith.constant 0 : i32
    return %arg0, %arg1, %c0_i32 : i32, i32, i32
  }
  func.func @transform_1(%arg0: i32, %arg1: i32) -> (i32, i32, i32) {
    %c0_i32 = arith.constant 0 : i32
    %c0_i32_0 = arith.constant 0 : i32
    %c0_i32_1 = arith.constant 0 : i32
    return %arg0, %c0_i32, %c0_i32_0 : i32, i32, i32
  }
  func.func @transform_2(%arg0: i32, %arg1: i32) -> (i32, i32) {
    %c0_i32 = arith.constant 0 : i32
    %c0_i32_0 = arith.constant 0 : i32
    %c0_i32_1 = arith.constant 0 : i32
    return %c0_i32, %c0_i32_0 : i32, i32
  }
  func.func @transform_3(%arg0: i32, %arg1: i32) -> (i32, i32) {
    %c0_i32 = arith.constant 0 : i32
    %c0_i32_0 = arith.constant 0 : i32
    %c0_i32_1 = arith.constant 0 : i32
    return %c0_i32, %c0_i32_0 : i32, i32
  }
  func.func @transform_4(%arg0: i32, %arg1: i32) -> (i32, i32) {
    %c0_i32 = arith.constant 0 : i32
    %c0_i32_0 = arith.constant 0 : i32
    %c0_i32_1 = arith.constant 0 : i32
    return %c0_i32, %c0_i32_0 : i32, i32
  }
  func.func @transform_5(%arg0: i32, %arg1: i32) -> (i32, i32) {
    %c0_i32 = arith.constant 0 : i32
    %c0_i32_0 = arith.constant 0 : i32
    %c0_i32_1 = arith.constant 0 : i32
    return %c0_i32, %c0_i32_0 : i32, i32
  }
  func.func @transform_6(%arg0: i32, %arg1: i32) -> (i32, i32) {
    %c0_i32 = arith.constant 0 : i32
    %c0_i32_0 = arith.constant 0 : i32
    %c0_i32_1 = arith.constant 0 : i32
    return %c0_i32, %c0_i32_0 : i32, i32
  }
  func.func @transform_7(%arg0: i32, %arg1: i32) -> (i32, i32) {
    %c0_i32 = arith.constant 0 : i32
    %c0_i32_0 = arith.constant 0 : i32
    %c0_i32_1 = arith.constant 0 : i32
    return %c0_i32, %c0_i32_0 : i32, i32
  }
  func.func @transform_8(%arg0: i32, %arg1: i32) -> (i32, i32) {
    %c0_i32 = arith.constant 0 : i32
    %c0_i32_0 = arith.constant 0 : i32
    %c0_i32_1 = arith.constant 0 : i32
    return %c0_i32, %c0_i32_0 : i32, i32
  }
  func.func @transform_9(%arg0: i32, %arg1: i32) -> (i32, i32) {
    %c0_i32 = arith.constant 0 : i32
    %c0_i32_0 = arith.constant 0 : i32
    %c0_i32_1 = arith.constant 0 : i32
    return %c0_i32, %c0_i32_0 : i32, i32
  }
  func.func @transform_10(%arg0: i32, %arg1: i32) -> (i32, i32) {
    %c0_i32 = arith.constant 0 : i32
    %c0_i32_0 = arith.constant 0 : i32
    %c0_i32_1 = arith.constant 0 : i32
    return %c0_i32, %c0_i32_0 : i32, i32
  }
  func.func @transform_11(%arg0: i32, %arg1: i32) -> (i32, i32) {
    %c0_i32 = arith.constant 0 : i32
    %c0_i32_0 = arith.constant 0 : i32
    %c0_i32_1 = arith.constant 0 : i32
    return %c0_i32, %c0_i32_0 : i32, i32
  }
  func.func @transform_12(%arg0: i32, %arg1: i32) -> (i32, i32) {
    %c0_i32 = arith.constant 0 : i32
    %c0_i32_0 = arith.constant 0 : i32
    %c0_i32_1 = arith.constant 0 : i32
    return %c0_i32, %c0_i32_0 : i32, i32
  }
  func.func @transform_13(%arg0: i32, %arg1: i32) -> (i32, i32, i32) {
    %c0_i32 = arith.constant 0 : i32
    %c0_i32_0 = arith.constant 0 : i32
    return %arg0, %arg1, %c0_i32 : i32, i32, i32
  }
  func.func @transform_14(%arg0: i32, %arg1: i32) -> (i32, i32, i32) {
    %c0_i32 = arith.constant 0 : i32
    %c0_i32_0 = arith.constant 0 : i32
    return %arg0, %arg1, %c0_i32 : i32, i32, i32
  }
  func.func @transform_15(%arg0: i32, %arg1: i32) -> (i32, i32, i32) {
    %c0_i32 = arith.constant 0 : i32
    %c0_i32_0 = arith.constant 0 : i32
    return %arg0, %arg1, %c0_i32 : i32, i32, i32
  }
}

</mosaic_0001>

<bundles_post_ra>
// kernel: tpu_custom_call.1
= control target key start
LH: loop header
LB: loop body
LE: loop exit
PB: predicated region body
PF: predicated region fallthrough
CT: control target
= control target key end

     0   :  { %s3531_s0 = inlined_call_operand.vmem [shape: f32[2,16,8], index: 0, kind: input, shape index: {}]   ;;  %s3532_s1 = inlined_call_operand.vmem [shape: f32[2,16,8], index: 1, kind: input, shape index: {}]   ;;  %s3533_s2 = inlined_call_operand.hbm [shape: bf16[8,32], index: 2, kind: input, shape index: {}]   ;;  %s3534_s3 = inlined_call_operand.vmem [shape: bf16[32,32], index: 3, kind: input, shape index: {}]   ;;  %s3535_s4 = inlined_call_operand.vmem [shape: bf16[32,64], index: 4, kind: input, shape index: {}]   ;;  %s3536_s5 = inlined_call_operand.vmem [shape: bf16[32,32], index: 5, kind: input, shape index: {}]   ;;  %s3537_s6 = inlined_call_operand.vmem [shape: bf16[32,64], index: 6, kind: input, shape index: {}]   ;;  %s3538_s7 = inlined_call_operand.vmem [shape: bf16[64,32], index: 7, kind: input, shape index: {}]   ;;  %s3539_s8 = inlined_call_operand.vmem [shape: bf16[32,128], index: 8, kind: input, shape index: {}]   ;;  %s3540_s9 = inlined_call_operand.vmem [shape: bf16[32,32], index: 9, kind: input, shape index: {}]   ;;  %s3541_s10 = inlined_call_operand.vmem [shape: bf16[32,32], index: 10, kind: input, shape index: {}]   ;;  %s3542_s11 = inlined_call_operand.vmem [shape: bf16[32,128], index: 11, kind: input, shape index: {}]   ;;  %s3543_s12 = inlined_call_operand.hbm [shape: f32[14,128], index: 12, kind: input, shape index: {}]   ;;  %s3544_s13 = inlined_call_operand.hbm [shape: f32[2,16,32], index: 13, kind: output, shape index: {0}]   ;;  %s3545_s14 = inlined_call_operand.hbm [shape: f32[2,16,128], index: 14, kind: output, shape index: {1}]   ;;  %s3546_s15 = inlined_call_operand.hbm [shape: f32[2,16,128], index: 15, kind: output, shape index: {2}]  }
   0x1   :  { %3559 = sst [smem:[#allocation22_spill]] %s3531_s0 }
   0x2   :  { %3560 = sst [smem:[#allocation23_spill]] %s3532_s1 }
   0x3   :  { %3561 = sst [smem:[#allocation24_spill]] %s3533_s2 }
   0x4   :  { %3562 = sst [smem:[#allocation25_spill]] %s3534_s3 }
   0x5   :  { %21 = vsyncpa [#allocation3], 0 }
   0x6   :  { %22 = vsyncpa [#allocation6], 0 }
   0x7   :  { %23 = vsyncpa [#allocation4], 0 }
   0x8   :  { %25 = vsyncpa [#allocation4 + $0x1], 0 }
   0x9   :  { %26 = vsyncpa [#allocation9], 0 }
   0xa   :  { %28 = vsyncpa [#allocation9 + $0x1], 0  ;;  %s2994_s18 = smov 0   ;;  %s2996_s19 = smov 0  }
   0xb   :  { %s2998_s20 = smov 0   ;;  %s3000_s21 = smov 0  }
   0xc   :  { %s3002_s22 = smov 0   ;;  %s3004_s23 = smov 0  }
   0xd LB: > { %3563 = sst [smem:[#allocation15_spill]] %s2874_s18  ;;  %s3025_s24 = sadd.s32 4294967295, %s2894_s23   ;;  %s2894_s23 = sphi %s3004_s23, %s34_s23   ;;  %s2890_s22 = sphi %s3002_s22, %s3593_s22   ;;  %s2886_s21 = sphi %s3000_s21, %s3592_s21   ;;  %s2882_s20 = sphi %s2998_s20, %s3591_s20   ;;  %s2878_s19 = sphi %s2996_s19, %s3595_s19   ;;  %s2874_s18 = sphi %s2994_s18, %s3594_s18  }
   0xe   : > { %3564 = sst [smem:[#allocation16_spill]] %s2882_s20  ;;  %s3548_s25 = sadd.s32 4294967294, %s2894_s23  }
   0xf   : > { %3565 = sst [smem:[#allocation17_spill]] %s2890_s22  ;;  %s46_s26 = sadd.s32 1, %s2890_s22 }
  0x10   : > { %3566 = sst [smem:[#allocation18_spill]] %s2894_s23  ;;  %s340_s27 = sadd.s32 1, %s2882_s20 }
  0x11   : > { %p48_p0 = scmp.ge.s32.totalorder %s46_s26, 2  ;;  %p350_p1 = scmp.ne.s32.totalorder %s2882_s20, %s2878_s19 }
  0x12   : > { %p351_p2 = scmp.eq.s32.totalorder %s3025_s24, 1  ;;  %p356_p3 = scmp.ne.s32.totalorder %s2878_s19, %s2874_s18 }
  0x13   : > { %s3597_s26 = smov (%p48_p0, %s46_s26), 0  ;;  %p357_p5 = scmp.eq.s32.totalorder %s3548_s25, 1 }
  0x14   : > { %3567 = sst [smem:[#allocation19_spill]] %s3597_s26  ;;  %p3037_p4 = por %p351_p2, %p350_p1 }
  0x15   : > { %s335_s29 = ssub.s32 %s2890_s22, %s3597_s26  ;;  %p2269_p6 = scmp.ge.s32.totalorder %s2894_s23, 1 }
  0x16   : > { %s3568_s28 = scalar_select %p3037_p4, 1, 0 }
  0x17   : > { %p338_p7 = scmp.eq.s32.totalorder %s335_s29, 0  ;;  %p3046_p8 = por %p357_p5, %p356_p3 }
  0x18   : > { %p420_p9 = scmp.lt.s32.totalorder %s2894_s23, 3  ;;  %p3551_p11 = scmp.eq.s32.totalorder %s3025_s24, 0 }
  0x19   : > { %s3569_s30 = scalar_select %p3046_p8, 1, 0 }
  0x1a   : > { %s3052_s16 = scalar_select %p338_p7, %s2882_s20, %s340_s27  }
  0x1b   : > { %3570 = sst [smem:[#allocation20_spill]] %s3569_s30  ;;  %p3054_p10 = pnand %p2269_p6, %p420_p9 }
  0x1c   : > { %3571 = sst [smem:[#allocation21_spill]] %s3052_s16  ;;  %s2896_s18 = smov [#allocation2]  }
  0x1d   : > { %s3572_s17 = scalar_select %p3054_p10, 1, 0 }
  0x1e   : > { %p2559_p12 = pneg %p3054_p10  ;;  %s433_s25 = sshll.u32 %s2896_s18, 4  ;;  %s434_s25 = int_to_ptr.vmem [resolvable:$true] %s433_s25 }
  0x1f   : > { %s2897_s26 = smov [#allocation5]   ;;  %s2713_s27 = scalar_lea.vmem %s434_s25, 64 }
  0x20   : > { %s470_s29 = sshll.u32 %s2897_s26, 4  ;;  %p3063_p13 = pnand %p3551_p11, %p2559_p12  ;;  %s471_s29 = int_to_ptr.vmem [resolvable:$true] %s470_s29 }
  0x21   : > { %p2714_p1 = scmp.ne.s32.totalorder %s434_s25, %s2713_s27  ;;  %p2721_p5 = scmp.lt.s32.totalorder %s434_s25, %s434_s25 }
  0x22   : > { %p2704_p0 = pneg %p3063_p13  ;;  %p2722_p6 = scmp.lt.s32.totalorder %s2713_s27, %s2713_s27 }
  0x24   : > { %p2716_p2 = pnand %p2714_p1, %p2704_p0  ;;  %p2723_p7 = por %p2722_p6, %p2721_p5 }
  0x26   : > { %p2717_p3 = pneg %p2716_p2 }
  0x28   : > { %p2724_p9 = pnand %p2723_p7, %p2717_p3 }
  0x2a   : > { %2727 = shalt.err (!%p2724_p9)
}
  0x2b   : > { %s3574_s2 = sld [smem:[#allocation24_spill]]  ;;  %s2739_s16 = scalar_lea.vmem %s471_s29, 256 }
  0x2c   : > { %p2740_p12 = scmp.ne.s32.totalorder %s471_s29, %s2739_s16  ;;  %p2747_p1 = scmp.lt.s32.totalorder %s471_s29, %s471_s29 }
  0x2d   : > { %p2748_p2 = scmp.lt.s32.totalorder %s2739_s16, %s2739_s16 }
  0x2e   : > { %p2742_p11 = pnand %p2740_p12, %p2704_p0 }
  0x2f   : > { %p2749_p4 = por %p2748_p2, %p2747_p1 }
  0x30   : > { %p2743_p8 = pneg %p2742_p11 }
  0x31   : > { %2562 = dma.hbm_to_vmem [thread:$0]  (!%p3063_p13), %s3574_s2, 64, %s434_s25, [#allocation3]  }
  0x32   : > { %p2750_p10 = pnand %p2749_p4, %p2743_p8 }
  0x34   : > { %2753 = shalt.err (!%p2750_p10)
}
  0x35   : > { %s2898_s27 = smov 128   ;;  %s2899_s20 = smov 8  }
  0x36   : > { %2565 = dma.hbm_to_vmem [thread:$0]  (!%p3063_p13), %s3543_s12, 256, %s471_s29, [#allocation6], %s2898_s27, %s2898_s27, %s2899_s20  }
  0x37   : > { %p3575_p3 = scmp.ne.s32.totalorder %s3572_s17, 0 }
  0x38   : > { %p3576_p5 = scmp.eq.s32.totalorder (!%p3575_p3), %s3025_s24, 0 }
  0x39   : > { %507 = sbr.rel (%p3575_p3) target bundleno = 4603 (0x11fb), region = 72 }
  0x3e   : > { %2857 = dma.done.wait (%p3576_p5), [#allocation3], 64   ;;  %p3577_p11 = pmov %p3576_p5 }
  0x3f   : > { %p3578_p4 = pmov %p3576_p5 }
  0x40   : > { %2859 = vsyncadd (%p3577_p11), [#allocation3], 4294967232 }
  0x41   : > { %2861 = dma.done.wait (%p3578_p4), [#allocation6], 256   ;;  %p3579_p8 = pmov %p3578_p4 }
  0x42   : > { %p579_p10 = scmp.lt.s32.totalorder %s2886_s21, 1  ;;  %v2900_v0 = vmov 0.0   ;;  %vm2901_vm0 = vmmov 0   ;;  %vm614_vm1 = vcmask 1043456   ;;  %s3580_s0 = sld [smem:[#allocation22_spill]]  ;;  %vm610_vm2 = vcmask 64512  }
  0x43   : > { %2863 = vsyncadd (%p3579_p8), [#allocation6], 4294967040  ;;  %2393 = vmatprep.subr.bf16.mxu0 %v2900_v0  ;;  %2399 = vmatprep.subr.bf16.mxu1 %v2900_v0  ;;  %s3581_s1 = sld [smem:[#allocation23_spill]]  ;;  %v605_v1 = vld [vmem:[#allocation2] sm:$0xf]  ;;  %v2645_v10 = vld [vmem:[%s3535_s4 + $0x8] sm:$0xff]   ;;  %v606_v13 = vlaneseq }
  0x44   : > { %2395 = vmatprep.mubr.msk.bf16.mxu0 %vm2901_vm0, %v2900_v0  ;;  %2401 = vmatprep.mubr.msk.bf16.mxu1 %vm2901_vm0, %v2900_v0  ;;  %s580_s20 = scalar_select %p579_p10, %s2886_s21, 1  ;;  %v616_v4 = vsel %vm614_vm1, %v605_v1, 0  ;;  %v2647_v12 = vld [vmem:[%s3535_s4] sm:$0xff]   ;;  %vm724_vm3 = vcmask 261120   ;;  %vm895_vm4 = vcmask 130048   ;;  %vm1674_vm5 = vcmask 523264  }
  0x45   : > { %2394 = vmatpush3.bf16.msra.mxu0 %v616_v4  ;;  %2400 = vmatpush3.bf16.msra.mxu1 %v616_v4  ;;  %s3582_s3 = sld [smem:[#allocation25_spill]]  ;;  %v3134_v14 = vshrl.u32 %v606_v13, 7  ;;  %v3137_v16 = vld [vmem:[#allocation5] sm:$0xff]  ;;  %s2902_s16 = smov 96  }
  0x46   : > { %s2334_s22 = sshll.u32 %s580_s20, 4  ;;  %2405 = vmatprep.subr.bf16.mxu0 %v2900_v0  ;;  %2413 = vmatprep.subr.bf16.mxu1 %v2900_v0  ;;  %s2903_s17 = smov 120  }
  0x47   : > { %v608_v15 = vsub.s32 0, %v3134_v14  ;;  %v778_v32 = vsub.s32 2, %v3134_v14  ;;  %v710_v35 = vsub.s32 1, %v3134_v14  ;;  %s2904_s26 = smov 88   ;;  %s2905_s27 = smov 112  }
  0x48   : > { %s586_s30 = scalar_lea.vmem %s3580_s0, %s2334_s22  ;;  %s2906_s23 = smov 104  }
  0x49   : > { %s592_s29 = scalar_lea.vmem %s3581_s1, %s2334_s22  ;;  %v599_v2 = vld [vmem:[%s586_s30] sm:$0xff]  ;;  %v600_v3 = vld [vmem:[%s586_s30 + $0x8] sm:$0xff]  ;;  %v609_v19 = vrot.slane %v3137_v16, %v608_v15  ;;  %v779_v36 = vrot.slane %v3137_v16, %v778_v32  ;;  %v711_v41 = vrot.slane %v3137_v16, %v710_v35  ;;  %s2907_s25 = smov 80  }
  0x4a   : > { %v601_v5 = vpack.c.bf16 %v600_v3, %v599_v2  ;;  %v602_v6 = vld [vmem:[%s592_s29] sm:$0xff]  ;;  %v603_v7 = vld [vmem:[%s592_s29 + $0x8] sm:$0xff]  ;;  %s3406_s29 = sshll.u32 %s2886_s21, 8  ;;  %p3583_p0 = scmp.ne.s32.totalorder %s3568_s28, 0 }
  0x4b   : > { %v604_v8 = vpack.c.bf16 %v603_v7, %v602_v6  ;;  %v2644_v9 = vld [vmem:[%s3582_s3 + $0x8] sm:$0xff]   ;;  %v2646_v11 = vld [vmem:[%s3582_s3] sm:$0xff]  }
  0x4c   : > { %2396 = vmatmul.mubr.msk.bf16.vlgmr.msra.gmra.mxu0 %vm610_vm2, %v601_v5 }
  0x4d   : > { %2402 = vmatmul.mubr.msk.bf16.vlgmr.msra.gmra.mxu1 %vm610_vm2, %v604_v8  ;;  %2409 = vmatprep.mubr.msk.bf16.mxu0 %vm2901_vm0, %v2900_v0 }
  0x4e   : > { %2417 = vmatprep.mubr.msk.bf16.mxu1 %vm2901_vm0, %v2900_v0  ;;  %2406 = vmatpush3.bf16.msra.mxu0 %v2644_v9 }
  0x4f   : > { %2414 = vmatpush3.bf16.msra.mxu1 %v2645_v10  ;;  %2407 = vmatprep.subr.bf16.mxu0 %v2900_v0 }
  0x50   : > { %2415 = vmatprep.subr.bf16.mxu1 %v2900_v0 }
  0x52   : > { %2408 = vmatpush3.bf16.msra.mxu0 %v2646_v11 }
  0x53   : > { %2416 = vmatpush3.bf16.msra.mxu1 %v2647_v12  ;;  %2421 = vmatprep.subr.bf16.mxu0 %v2900_v0 }
  0x54   : > { %2427 = vmatprep.subr.bf16.mxu1 %v2900_v0 }
 0x10c   : > { %v652_v17 = vpop.f32.mrf.mxu0 }
 0x10d   : > { %v696_v18 = vpop.f32.mrf.mxu1  ;;  %v3142_v22 = vadd.f32 %v652_v17, %v609_v19 }
 0x10e   : > { %v2397_v20 = vpop.f32.mrf.mxu0  ;;  %v697_v25 = vadd.f32 %v696_v18, %v609_v19 }
 0x10f   : > { %v2403_v21 = vpop.f32.mrf.mxu1  ;;  %v836_v20 = vld [vmem:[%s3536_s5] sm:$0xf] }
 0x110   : > { %v655_v23 = vpop.f32.mrf.mxu0  ;;  %v972_v21 = vsel %vm614_vm1, %v836_v20, 0 }
 0x111   : > { %v699_v24 = vpop.f32.mrf.mxu1  ;;  %v3144_v26 = vadd.f32 %v655_v23, %v609_v19 }
 0x112   : > { %v700_v27 = vadd.f32 %v699_v24, %v609_v19  ;;  %v2398_v29 = vpop.f32.mrf.mxu0 }
 0x113   : > { %v2404_v28 = vpop.f32.mrf.mxu1  ;;  %v703_v30 = vpack.c.bf16 %v3144_v26, %v3142_v22 }
 0x114   : > { %v771_v31 = vpack.c.bf16 %v700_v27, %v697_v25 }
 0x115   : > { %2410 = vmatmul.mubr.msk.bf16.vlgmr.msra.gmra.mxu0 %vm724_vm3, %v703_v30 }
 0x116   : > { %2418 = vmatmul.mubr.msk.bf16.vlgmr.msra.gmra.mxu1 %vm724_vm3, %v771_v31  ;;  %2423 = vmatprep.mubr.msk.bf16.mxu0 %vm2901_vm0, %v2900_v0 }
 0x117   : > { %2429 = vmatprep.mubr.msk.bf16.mxu1 %vm2901_vm0, %v2900_v0 }
 0x1d5   : > { %v762_v33 = vpop.f32.mrf.mxu0 }
 0x1d6   : > { %v829_v34 = vpop.f32.mrf.mxu1  ;;  %v763_v48 = vadd.f32 %v762_v33, %v711_v41 }
 0x1d7   : > { %v2411_v37 = vpop.f32.mrf.mxu0  ;;  %v830_v42 = vadd.f32 %v829_v34, %v779_v36 }
 0x1d8   : > { %v2419_v38 = vpop.f32.mrf.mxu1  ;;  %v769_v51 = vmul.f32 0.35355338, %v763_v48 }
 0x1d9   : > { %v765_v39 = vpop.f32.mrf.mxu0 }
 0x1da   : > { %v832_v40 = vpop.f32.mrf.mxu1  ;;  %v766_v46 = vadd.f32 %v765_v39, %v711_v41 }
 0x1db   : > { %v833_v43 = vadd.f32 %v832_v40, %v779_v36  ;;  %v2412_v44 = vpop.f32.mrf.mxu0 }
 0x1dc   : > { %v2420_v45 = vpop.f32.mrf.mxu1  ;;  %v770_v50 = vmul.f32 0.35355338, %v766_v46 }
 0x1dd   : > { %v3162_v47 = vpack.c.bf16 %v833_v43, %v830_v42 }
 0x1de   : > { %v3167_v52 = vpack.c.bf16 %v770_v50, %v769_v51 }
 0x1df   : > { %v852_v49 = vsel %vm610_vm2, %v3162_v47, 0 }
 0x1e0   : > { %2422 = vmatpush3.bf16.xpose.msra.mxu0 %v852_v49  ;;  %v842_v49 = vsub.s32 3, %v3134_v14 }
 0x1e1   : > { %2433 = vmatprep.subr.bf16.mxu0 %v2900_v0 }
 0x1e2   : > { %v843_v50 = vrot.slane %v3137_v16, %v842_v49 }
 0x1e4   : > { %v844_v51 = vadd.f32 %v843_v50, %v3142_v22 }
 0x1e7   : > { %2424 = vmatmul.mubr.msk.bf16.vlgmr.msra.gmra.mxu0 %vm610_vm2, %v3167_v52 }
 0x1e8   : > { %2435 = vmatprep.mubr.msk.bf16.mxu0 %vm2901_vm0, %v2900_v0  ;;  %2434 = vmatpush3.bf16.msra.mxu0 %v972_v21 }
 0x1e9   : > { %2445 = vmatprep.subr.bf16.mxu0 %v2900_v0 }
 0x2a7   : > { %v888_v53 = vpop.f32.mrf.mxu0 }
 0x2a8   : > { %v896_v54 = vsel %vm895_vm4, %v888_v53, -inf }
 0x2a9   : > { %897 = vmax.xlane.f32.xlu0 %v896_v54  ;;  %v2425_v55 = vpop.f32.mrf.mxu0 }
 0x2ab   : > { %v891_v56 = vpop.f32.mrf.mxu0 }
 0x2ac   : > { %v899_v57 = vsel %vm895_vm4, %v891_v56, -inf }
 0x2ad   : > { %900 = vmax.xlane.f32.xlu0 %v899_v57  ;;  %v2426_v58 = vpop.f32.mrf.mxu0 }
 0x2c3   : > { %920 = vrot.lane.b32.xlu0 %v3162_v47, %s2902_s16 }
 0x332   : > { %v898_v59 = vpop.xlane.xlu0 %897 }
 0x333   : > { %v902_v60 = vsub.f32 %v888_v53, %v898_v59 }
 0x335   : > { %v904_v61 = vmul.f32 1.442695, %v902_v60 }
 0x336   : > { %v901_v62 = vpop.xlane.xlu0 %900 }
 0x337   : > { %2662 = vpow2.f32 %v904_v61  ;;  %v903_v63 = vsub.f32 %v891_v56, %v901_v62  ;;  %v845_v56 = vadd.f32 %v843_v50, %v3144_v26 }
 0x339   : > { %v906_v1 = vmul.f32 1.442695, %v903_v63 }
 0x33a   : > { %v921_v2 = vpop.permute.xlu0 %920 }
 0x33b   : > { %2664 = vpow2.f32 %v906_v1  ;;  %2428 = vmatpush3.bf16.msra.mxu1 %v921_v2 }
 0x33c   : > { %2439 = vmatprep.subr.bf16.mxu1 %v2900_v0 }
 0x344   : > { %v2663_v3 = vpop.eup %2662 }
 0x345   : > { %v908_v4 = vsel %vm895_vm4, %v2663_v3, 0.0 }
 0x346   : > { %909 = vadd.xlane.f32.xlu1 %v908_v4 }
 0x348   : > { %v2665_v5 = vpop.eup %2664 }
 0x349   : > { %v911_v6 = vsel %vm895_vm4, %v2665_v5, 0.0 }
 0x34a   : > { %912 = vadd.xlane.f32.xlu1 %v911_v6 }
 0x35b   : > { %1020 = vrot.lane.b32.xlu1 %v3162_v47, %s2903_s17 }
 0x35f   : > { %1018 = vrot.lane.b32.xlu1 %v3167_v52, %s2903_s17  ;;  %s2908_s17 = smov 72  }
 0x3cf   : > { %v910_v7 = vpop.xlane.xlu1 %909 }
 0x3d0   : > { %2666 = vrcp.f32 %v910_v7 }
 0x3d3   : > { %v913_v8 = vpop.xlane.xlu1 %912 }
 0x3d4   : > { %2668 = vrcp.f32 %v913_v8 }
 0x3d7   : > { %v1021_v13 = vpop.permute.xlu1 %1020 }
 0x3d8   : > { %v1026_v18 = vsel %vm610_vm2, %v1021_v13, 0 }
 0x3db   : > { %v1019_v19 = vpop.permute.xlu1 %1018 }
 0x3dd   : > { %v2667_v9 = vpop.eup %2666 }
 0x3de   : > { %v916_v11 = vmul.f32 %v2667_v9, %v2663_v3 }
 0x3e1   : > { %v2669_v10 = vpop.eup %2668 }
 0x3e2   : > { %v917_v12 = vmul.f32 %v2669_v10, %v2665_v5  ;;  %v837_v5 = vld [vmem:[%s3536_s5 + $0x4] sm:$0xf] }
 0x3e3   : > { %v1144_v6 = vsel %vm614_vm1, %v837_v5, 0 }
 0x3e4   : > { %v918_v17 = vpack.c.bf16 %v917_v12, %v916_v11 }
 0x3e6   : > { %2430 = vmatmul.mubr.msk.bf16.vlgmr.msra.gmra.mxu1 %vm895_vm4, %v918_v17 }
 0x3e7   : > { %2440 = vmatpush3.bf16.xpose.msra.mxu1 %v1026_v18  ;;  %2441 = vmatprep.mubr.msk.bf16.mxu1 %vm2901_vm0, %v2900_v0 }
 0x3e8   : > { %2451 = vmatprep.subr.bf16.mxu1 %v2900_v0 }
 0x3ee   : > { %2442 = vmatmul.mubr.msk.bf16.vlgmr.msra.gmra.mxu1 %vm610_vm2, %v1019_v19 }
 0x3ef   : > { %2453 = vmatprep.mubr.msk.bf16.mxu1 %vm2901_vm0, %v2900_v0  ;;  %2452 = vmatpush3.bf16.msra.mxu1 %v1144_v6 }
 0x3f0   : > { %2463 = vmatprep.subr.bf16.mxu1 %v2900_v0 }
 0x4a6   : > { %v960_v23 = vpop.f32.mrf.mxu1 }
 0x4a8   : > { %v2431_v24 = vpop.f32.mrf.mxu1 }
 0x4aa   : > { %v963_v25 = vpop.f32.mrf.mxu1 }
 0x4ab   : > { %v967_v27 = vpack.c.bf16 %v963_v25, %v960_v23 }
 0x4ac   : > { %v2432_v28 = vpop.f32.mrf.mxu1 }
 0x4ad   : > { %2436 = vmatmul.mubr.msk.bf16.vlgmr.msra.gmra.mxu0 %vm610_vm2, %v967_v27 }
 0x4ae   : > { %v1062_v29 = vpop.f32.mrf.mxu1  ;;  %2447 = vmatprep.mubr.msk.bf16.mxu0 %vm2901_vm0, %v2900_v0 }
 0x4af   : > { %v1069_v30 = vsel %vm895_vm4, %v1062_v29, -inf }
 0x4b0   : > { %1070 = vmax.xlane.f32.xlu1 %v1069_v30  ;;  %v2443_v31 = vpop.f32.mrf.mxu1 }
 0x4b2   : > { %v1065_v33 = vpop.f32.mrf.mxu1 }
 0x4b3   : > { %v1072_v34 = vsel %vm895_vm4, %v1065_v33, -inf }
 0x4b4   : > { %1073 = vmax.xlane.f32.xlu0 %v1072_v34  ;;  %v2444_v36 = vpop.f32.mrf.mxu1 }
 0x4c1   : > { %1092 = vrot.lane.b32.xlu1 %v3162_v47, %s2904_s26 }
 0x4c5   : > { %1189 = vrot.lane.b32.xlu1 %v3167_v52, %s2905_s27 }
 0x539   : > { %v1071_v37 = vpop.xlane.xlu1 %1070 }
 0x53a   : > { %v1075_v38 = vsub.f32 %v1062_v29, %v1071_v37 }
 0x53c   : > { %v1077_v39 = vmul.f32 1.442695, %v1075_v38 }
 0x53d   : > { %v1093_v40 = vpop.permute.xlu1 %1092  ;;  %v1074_v41 = vpop.xlane.xlu0 %1073 }
 0x53e   : > { %2670 = vpow2.f32 %v1077_v39  ;;  %v1076_v42 = vsub.f32 %v1065_v33, %v1074_v41  ;;  %2446 = vmatpush3.bf16.msra.mxu0 %v1093_v40 }
 0x53f   : > { %2457 = vmatprep.subr.bf16.mxu0 %v2900_v0 }
 0x540   : > { %v1079_v43 = vmul.f32 1.442695, %v1076_v42 }
 0x541   : > { %v1190_v26 = vpop.permute.xlu1 %1189 }
 0x542   : > { %2672 = vpow2.f32 %v1079_v43 }
 0x54b   : > { %v2671_v44 = vpop.eup %2670 }
 0x54c   : > { %v1081_v45 = vsel %vm895_vm4, %v2671_v44, 0.0 }
 0x54d   : > { %1082 = vadd.xlane.f32.xlu0 %v1081_v45 }
 0x54f   : > { %v2673_v46 = vpop.eup %2672 }
 0x550   : > { %v1084_v48 = vsel %vm895_vm4, %v2673_v46, 0.0 }
 0x551   : > { %1085 = vadd.xlane.f32.xlu0 %v1084_v48 }
 0x567   : > { %1191 = vrot.lane.b32.xlu0 %v3162_v47, %s2905_s27  ;;  %s3412_s27 = scalar_lea.hbm %s3545_s14, %s3406_s29 }
 0x56d   : > { %v1008_v53 = vpop.f32.mrf.mxu0 }
 0x56e   : > { %v3210_v54 = vadd.f32 %v1008_v53, %v844_v51 }
 0x56f   : > { %v2437_v55 = vpop.f32.mrf.mxu0 }
 0x571   : > { %v1011_v57 = vpop.f32.mrf.mxu0 }
 0x572   : > { %v1016_v58 = vadd.f32 %v1011_v57, %v845_v56 }
 0x573   : > { %v2438_v59 = vpop.f32.mrf.mxu0 }
 0x5d6   : > { %v1083_v60 = vpop.xlane.xlu0 %1082 }
 0x5d7   : > { %2674 = vrcp.f32 %v1083_v60 }
 0x5da   : > { %v1086_v61 = vpop.xlane.xlu0 %1085 }
 0x5db   : > { %2676 = vrcp.f32 %v1086_v61 }
 0x5de   : > { %v1192_v3 = vpop.permute.xlu0 %1191 }
 0x5df   : > { %v1197_v22 = vsel %vm610_vm2, %v1192_v3, 0 }
 0x5e4   : > { %v2675_v62 = vpop.eup %2674 }
 0x5e5   : > { %v1089_v1 = vmul.f32 %v2675_v62, %v2671_v44 }
 0x5e8   : > { %v2677_v63 = vpop.eup %2676 }
 0x5e9   : > { %v1090_v2 = vmul.f32 %v2677_v63, %v2673_v46 }
 0x5eb   : > { %v1091_v4 = vpack.c.bf16 %v1090_v2, %v1089_v1 }
 0x5ed   : > { %2448 = vmatmul.mubr.msk.bf16.vlgmr.msra.gmra.mxu0 %vm895_vm4, %v1091_v4 }
 0x5ee   : > { %2458 = vmatpush3.bf16.xpose.msra.mxu0 %v1197_v22  ;;  %2459 = vmatprep.mubr.msk.bf16.mxu0 %vm2901_vm0, %v2900_v0 }
 0x5ef   : > { %2469 = vmatprep.subr.bf16.mxu0 %v2900_v0 }
 0x5f5   : > { %2460 = vmatmul.mubr.msk.bf16.vlgmr.msra.gmra.mxu0 %vm610_vm2, %v1190_v26 }
 0x5f6   : > { %2471 = vmatprep.mubr.msk.bf16.mxu0 %vm2901_vm0, %v2900_v0 }
 0x6ad   : > { %v1132_v7 = vpop.f32.mrf.mxu0 }
 0x6af   : > { %v2449_v8 = vpop.f32.mrf.mxu0 }
 0x6b1   : > { %v1135_v9 = vpop.f32.mrf.mxu0 }
 0x6b2   : > { %v1139_v10 = vpack.c.bf16 %v1135_v9, %v1132_v7 }
 0x6b3   : > { %v2450_v11 = vpop.f32.mrf.mxu0 }
 0x6b4   : > { %2454 = vmatmul.mubr.msk.bf16.vlgmr.msra.gmra.mxu1 %vm610_vm2, %v1139_v10 }
 0x6b5   : > { %v1233_v12 = vpop.f32.mrf.mxu0  ;;  %2465 = vmatprep.mubr.msk.bf16.mxu1 %vm2901_vm0, %v2900_v0 }
 0x6b6   : > { %v1240_v13 = vsel %vm895_vm4, %v1233_v12, -inf }
 0x6b7   : > { %1241 = vmax.xlane.f32.xlu1 %v1240_v13  ;;  %v2461_v17 = vpop.f32.mrf.mxu0 }
 0x6b9   : > { %v1236_v18 = vpop.f32.mrf.mxu0 }
 0x6ba   : > { %v1243_v19 = vsel %vm895_vm4, %v1236_v18, -inf }
 0x6bb   : > { %1244 = vmax.xlane.f32.xlu0 %v1243_v19  ;;  %v2462_v20 = vpop.f32.mrf.mxu0 }
 0x740   : > { %v1242_v21 = vpop.xlane.xlu1 %1241 }
 0x741   : > { %v1246_v23 = vsub.f32 %v1233_v12, %v1242_v21 }
 0x743   : > { %v1248_v24 = vmul.f32 1.442695, %v1246_v23 }
 0x744   : > { %v1245_v25 = vpop.xlane.xlu0 %1244 }
 0x745   : > { %2678 = vpow2.f32 %v1248_v24  ;;  %v1247_v27 = vsub.f32 %v1236_v18, %v1245_v25 }
 0x747   : > { %v1250_v28 = vmul.f32 1.442695, %v1247_v27 }
 0x749   : > { %2680 = vpow2.f32 %v1250_v28 }
 0x752   : > { %v2679_v29 = vpop.eup %2678 }
 0x753   : > { %v1252_v30 = vsel %vm895_vm4, %v2679_v29, 0.0 }
 0x754   : > { %1253 = vadd.xlane.f32.xlu0 %v1252_v30  ;;  %v839_v30 = vld [vmem:[%s3536_s5 + $0xc] sm:$0xf] }
 0x756   : > { %v2681_v31 = vpop.eup %2680 }
 0x757   : > { %v1255_v33 = vsel %vm895_vm4, %v2681_v31, 0.0 }
 0x758   : > { %1256 = vadd.xlane.f32.xlu1 %v1255_v33 }
 0x769   : > { %1362 = vrot.lane.b32.xlu1 %v3162_v47, %s2906_s23 }
 0x76a   : > { %1263 = vrot.lane.b32.xlu0 %v3162_v47, %s2907_s25  ;;  %s3558_s25 = sand.u32 1, %s2878_s19  }
 0x76b   : > { %s3345_s30 = sshll.u32 %s3558_s25, 4 }
 0x76c   : > { %s3348_s16 = scalar_lea.vmem [#allocation7], %s3345_s30 }
 0x76d   : > { %1360 = vrot.lane.b32.xlu1 %v3167_v52, %s2906_s23  ;;  %s2051_s20 = sshll.u32 %s3348_s16, 4  ;;  %s2030_s23 = sand.u32 1, %s3025_s24   ;;  %s3400_s20 = int_to_ptr.vmem [resolvable:$true] %s2051_s20 }
 0x76e   : > { %s3414_s25 = scalar_lea.sflag [#allocation9], %s2030_s23 }
 0x774   : > { %v1180_v34 = vpop.f32.mrf.mxu1 }
 0x775   : > { %v3237_v36 = vadd.f32 %v1180_v34, %v3210_v54  ;;  %v838_v54 = vld [vmem:[%s3536_s5 + $0x8] sm:$0xf] }
 0x776   : > { %v2455_v37 = vpop.f32.mrf.mxu1  ;;  %v1315_v55 = vsel %vm614_vm1, %v838_v54, 0 }
 0x777   : > { %2470 = vmatpush3.bf16.msra.mxu0 %v1315_v55 }
 0x778   : > { %v1183_v38 = vpop.f32.mrf.mxu1  ;;  %2481 = vmatprep.subr.bf16.mxu0 %v2900_v0 }
 0x779   : > { %v3239_v39 = vadd.f32 %v1183_v38, %v1016_v58 }
 0x77a   : > { %v2456_v40 = vpop.f32.mrf.mxu1 }
 0x7dd   : > { %v1254_v41 = vpop.xlane.xlu0 %1253 }
 0x7de   : > { %2682 = vrcp.f32 %v1254_v41 }
 0x7e1   : > { %v1257_v42 = vpop.xlane.xlu1 %1256  ;;  %v1264_v43 = vpop.permute.xlu0 %1263 }
 0x7e2   : > { %2684 = vrcp.f32 %v1257_v42  ;;  %2464 = vmatpush3.bf16.msra.mxu1 %v1264_v43 }
 0x7e3   : > { %2475 = vmatprep.subr.bf16.mxu1 %v2900_v0 }
 0x7e5   : > { %v1363_v48 = vpop.permute.xlu1 %1362 }
 0x7e6   : > { %v1368_v51 = vsel %vm610_vm2, %v1363_v48, 0 }
 0x7e9   : > { %v1361_v53 = vpop.permute.xlu1 %1360 }
 0x7eb   : > { %v2683_v44 = vpop.eup %2682 }
 0x7ec   : > { %v1260_v52 = vmul.f32 %v2683_v44, %v2679_v29 }
 0x7ef   : > { %v2685_v45 = vpop.eup %2684 }
 0x7f0   : > { %v1261_v46 = vmul.f32 %v2685_v45, %v2681_v31  ;;  %v1486_v31 = vsel %vm614_vm1, %v839_v30, 0 }
 0x7f2   : > { %v1262_v50 = vpack.c.bf16 %v1261_v46, %v1260_v52 }
 0x7f4   : > { %2466 = vmatmul.mubr.msk.bf16.vlgmr.msra.gmra.mxu1 %vm895_vm4, %v1262_v50 }
 0x7f5   : > { %2476 = vmatpush3.bf16.xpose.msra.mxu1 %v1368_v51  ;;  %2477 = vmatprep.mubr.msk.bf16.mxu1 %vm2901_vm0, %v2900_v0 }
 0x7f6   : > { %2487 = vmatprep.subr.bf16.mxu1 %v2900_v0 }
 0x7fc   : > { %2478 = vmatmul.mubr.msk.bf16.vlgmr.msra.gmra.mxu1 %vm610_vm2, %v1361_v53 }
 0x7fd   : > { %2489 = vmatprep.mubr.msk.bf16.mxu1 %vm2901_vm0, %v2900_v0  ;;  %2488 = vmatpush3.bf16.msra.mxu1 %v1486_v31 }
 0x7fe   : > { %2501 = vmatprep.subr.bf16.mxu1 %v2900_v0 }
 0x8b4   : > { %v1303_v56 = vpop.f32.mrf.mxu1 }
 0x8b6   : > { %v2467_v57 = vpop.f32.mrf.mxu1 }
 0x8b8   : > { %v1306_v58 = vpop.f32.mrf.mxu1 }
 0x8b9   : > { %v1310_v59 = vpack.c.bf16 %v1306_v58, %v1303_v56 }
 0x8ba   : > { %v2468_v60 = vpop.f32.mrf.mxu1 }
 0x8bb   : > { %2472 = vmatmul.mubr.msk.bf16.vlgmr.msra.gmra.mxu0 %vm610_vm2, %v1310_v59  ;;  %v2648_v59 = vld [vmem:[%s3537_s6 + $0x8] sm:$0xff]   ;;  %v2649_v60 = vld [vmem:[%s3537_s6] sm:$0xff]  }
 0x8bc   : > { %v1404_v61 = vpop.f32.mrf.mxu1  ;;  %2483 = vmatprep.mubr.msk.bf16.mxu0 %vm2901_vm0, %v2900_v0 }
 0x8bd   : > { %v1411_v62 = vsel %vm895_vm4, %v1404_v61, -inf }
 0x8be   : > { %1412 = vmax.xlane.f32.xlu1 %v1411_v62  ;;  %v2479_v63 = vpop.f32.mrf.mxu1 }
 0x8c0   : > { %v1407_v1 = vpop.f32.mrf.mxu1 }
 0x8c1   : > { %v1414_v2 = vsel %vm895_vm4, %v1407_v1, -inf }
 0x8c2   : > { %1415 = vmax.xlane.f32.xlu0 %v1414_v2  ;;  %v2480_v3 = vpop.f32.mrf.mxu1 }
 0x8cf   : > { %1434 = vrot.lane.b32.xlu1 %v3162_v47, %s2908_s17  ;;  %s3379_s17 = scalar_lea.vmem [#allocation8], %s3345_s30 }
 0x8d0   : > { %s2069_s22 = sshll.u32 %s3379_s17, 4  ;;  %s3402_s22 = int_to_ptr.vmem [resolvable:$true] %s2069_s22 }
 0x947   : > { %v1413_v4 = vpop.xlane.xlu1 %1412 }
 0x948   : > { %v1417_v22 = vsub.f32 %v1404_v61, %v1413_v4  ;;  %v2650_v61 = vld [vmem:[%s3538_s7 + $0x18] sm:$0xff]  }
 0x94a   : > { %v1419_v26 = vmul.f32 1.442695, %v1417_v22  ;;  %v1560_v22 = vsub.s32 4, %v3134_v14 }
 0x94b   : > { %v1435_v5 = vpop.permute.xlu1 %1434  ;;  %v1416_v6 = vpop.xlane.xlu0 %1415 }
 0x94c   : > { %2686 = vpow2.f32 %v1419_v26  ;;  %v1418_v7 = vsub.f32 %v1407_v1, %v1416_v6  ;;  %2482 = vmatpush3.bf16.msra.mxu0 %v1435_v5  ;;  %v1561_v6 = vrot.slane %v3137_v16, %v1560_v22 }
 0x94d   : > { %2493 = vmatprep.subr.bf16.mxu0 %v2900_v0 }
 0x94e   : > { %v1421_v8 = vmul.f32 1.442695, %v1418_v7  ;;  %v1566_v7 = vsub.s32 5, %v3134_v14 }
 0x950   : > { %2688 = vpow2.f32 %v1421_v8 }
 0x959   : > { %v2687_v9 = vpop.eup %2686 }
 0x95a   : > { %v1423_v10 = vsel %vm895_vm4, %v2687_v9, 0.0 }
 0x95b   : > { %1424 = vadd.xlane.f32.xlu0 %v1423_v10 }
 0x95d   : > { %v2689_v11 = vpop.eup %2688 }
 0x95e   : > { %v1426_v12 = vsel %vm895_vm4, %v2689_v11, 0.0 }
 0x95f   : > { %1427 = vadd.xlane.f32.xlu0 %v1426_v12 }
 0x97b   : > { %v1351_v47 = vpop.f32.mrf.mxu0 }
 0x97c   : > { %v1358_v13 = vadd.f32 %v1351_v47, %v3237_v36 }
 0x97d   : > { %v2473_v17 = vpop.f32.mrf.mxu0 }
 0x97f   : > { %v1354_v18 = vpop.f32.mrf.mxu0 }
 0x980   : > { %v1359_v19 = vadd.f32 %v1354_v18, %v3239_v39  ;;  %v2651_v18 = vld [vmem:[%s3538_s7 + $0x10] sm:$0xff]  }
 0x981   : > { %v2474_v20 = vpop.f32.mrf.mxu0 }
 0x982   : > { %v2653_v20 = vld [vmem:[%s3538_s7] sm:$0xff]  }
 0x9e4   : > { %v1425_v21 = vpop.xlane.xlu0 %1424 }
 0x9e5   : > { %2690 = vrcp.f32 %v1425_v21  ;;  %v1577_v21 = vsub.s32 6, %v3134_v14 }
 0x9e8   : > { %v1428_v23 = vpop.xlane.xlu0 %1427 }
 0x9e9   : > { %2692 = vrcp.f32 %v1428_v23  ;;  %v1578_v23 = vrot.slane %v3137_v16, %v1577_v21 }
 0x9f2   : > { %v2691_v24 = vpop.eup %2690 }
 0x9f3   : > { %v1431_v27 = vmul.f32 %v2691_v24, %v2687_v9 }
 0x9f6   : > { %v2693_v25 = vpop.eup %2692 }
 0x9f7   : > { %v1432_v28 = vmul.f32 %v2693_v25, %v2689_v11  ;;  %v1567_v11 = vrot.slane %v3137_v16, %v1566_v7 }
 0x9f9   : > { %v1433_v29 = vpack.c.bf16 %v1432_v28, %v1431_v27 }
 0x9fb   : > { %2484 = vmatmul.mubr.msk.bf16.vlgmr.msra.gmra.mxu0 %vm895_vm4, %v1433_v29 }
 0x9fc   : > { %2497 = vmatprep.mubr.msk.bf16.mxu0 %vm2901_vm0, %v2900_v0  ;;  %2494 = vmatpush3.bf16.msra.mxu0 %v2648_v59  ;;  %v2654_v59 = vld [vmem:[%s3539_s8 + $0x8] sm:$0xff]  }
 0x9fd   : > { %2495 = vmatprep.subr.bf16.mxu0 %v2900_v0 }
 0xa00   : > { %2496 = vmatpush3.bf16.msra.mxu0 %v2649_v60  ;;  %v2655_v60 = vld [vmem:[%s3539_s8] sm:$0xff]  }
 0xa01   : > { %2513 = vmatprep.subr.bf16.mxu0 %v2900_v0 }
 0xabb   : > { %v1474_v33 = vpop.f32.mrf.mxu0 }
 0xabd   : > { %v2485_v34 = vpop.f32.mrf.mxu0 }
 0xabf   : > { %v1477_v36 = vpop.f32.mrf.mxu0 }
 0xac0   : > { %v1481_v37 = vpack.c.bf16 %v1477_v36, %v1474_v33  ;;  %v1648_v36 = vsub.s32 7, %v3134_v14 }
 0xac1   : > { %v2486_v38 = vpop.f32.mrf.mxu0 }
 0xac2   : > { %2490 = vmatmul.mubr.msk.bf16.vlgmr.msra.gmra.mxu1 %vm610_vm2, %v1481_v37  ;;  %v1649_v37 = vrot.slane %v3137_v16, %v1648_v36 }
 0xac3   : > { %2509 = vmatprep.mubr.msk.bf16.mxu1 %vm2901_vm0, %v2900_v0  ;;  %2502 = vmatpush3.bf16.msra.mxu1 %v2650_v61 }
 0xac4   : > { %2503 = vmatprep.subr.bf16.mxu1 %v2900_v0 }
 0xac7   : > { %2504 = vmatpush3.bf16.msra.mxu1 %v2651_v18  ;;  %v2658_v18 = vld [vmem:[%s3541_s10 + $0x8] sm:$0xff]  }
 0xac8   : > { %2505 = vmatprep.subr.bf16.mxu1 %v2900_v0 }
 0xb82   : > { %v1522_v39 = vpop.f32.mrf.mxu1 }
 0xb83   : > { %v1529_v40 = vadd.f32 %v1522_v39, %v1358_v13 }
 0xb84   : > { %v2491_v41 = vpop.f32.mrf.mxu1 }
 0xb85   : > { %v1531_v42 = vsel %vm724_vm3, %v1529_v40, 0.0 }
 0xb86   : > { %1532 = vadd.xlane.f32.xlu0 %v1531_v42  ;;  %v1525_v43 = vpop.f32.mrf.mxu1 }
 0xb87   : > { %v1530_v44 = vadd.f32 %v1525_v43, %v1359_v19  ;;  %v2652_v19 = vld [vmem:[%s3538_s7 + $0x8] sm:$0xff]  }
 0xb88   : > { %v2492_v45 = vpop.f32.mrf.mxu1  ;;  %2506 = vmatpush3.bf16.msra.mxu1 %v2652_v19  ;;  %v2659_v19 = vld [vmem:[%s3541_s10] sm:$0xff]  }
 0xb89   : > { %v1534_v52 = vsel %vm724_vm3, %v1530_v44, 0.0  ;;  %2507 = vmatprep.subr.bf16.mxu1 %v2900_v0 }
 0xb8a   : > { %1535 = vadd.xlane.f32.xlu0 %v1534_v52 }
 0xb8c   : > { %2508 = vmatpush3.bf16.msra.mxu1 %v2653_v20 }
 0xb8d   : > { %2529 = vmatprep.subr.bf16.mxu1 %v2900_v0 }
 0xc0f   : > { %v1533_v46 = vpop.xlane.xlu0 %1532 }
 0xc10   : > { %v1538_v48 = vmul.f32 0.03125, %v1533_v46 }
 0xc12   : > { %v1540_v50 = vsub.f32 %v1529_v40, %v1538_v48 }
 0xc13   : > { %v1536_v51 = vpop.xlane.xlu0 %1535 }
 0xc14   : > { %v1539_v53 = vmul.f32 0.03125, %v1536_v51  ;;  %v1542_v54 = vmul.f32 %v1540_v50, %v1540_v50 }
 0xc16   : > { %v1541_v55 = vsub.f32 %v1530_v44, %v1539_v53  ;;  %v1544_v56 = vsel %vm724_vm3, %v1542_v54, 0.0 }
 0xc17   : > { %1545 = vadd.xlane.f32.xlu0 %v1544_v56 }
 0xc18   : > { %v1543_v57 = vmul.f32 %v1541_v55, %v1541_v55 }
 0xc1a   : > { %v1547_v58 = vsel %vm724_vm3, %v1543_v57, 0.0 }
 0xc1b   : > { %1548 = vadd.xlane.f32.xlu0 %v1547_v58 }
 0xca0   : > { %v1546_v62 = vpop.xlane.xlu0 %1545 }
 0xca1   : > { %v1550_v63 = vmul.f32 0.03125, %v1546_v62 }
 0xca3   : > { %v1552_v1 = vadd.f32 1e-05, %v1550_v63 }
 0xca4   : > { %v1549_v2 = vpop.xlane.xlu0 %1548 }
 0xca5   : > { %2694 = vrsqrt.f32 %v1552_v1  ;;  %v1551_v3 = vmul.f32 0.03125, %v1549_v2 }
 0xca7   : > { %v1553_v4 = vadd.f32 1e-05, %v1551_v3 }
 0xca9   : > { %2696 = vrsqrt.f32 %v1553_v4  ;;  %v3334_v4 = vld [vmem:[#allocation5 + $0x8] sm:$0x3f] }
 0xcaa   : > { %v1769_v20 = vrot.slane %v3334_v4, %v778_v32 }
 0xcb2   : > { %v2695_v26 = vpop.eup %2694 }
 0xcb3   : > { %v1556_v5 = vmul.f32 %v2695_v26, %v1540_v50  ;;  %v1750_v26 = vrot.slane %v3334_v4, %v608_v15 }
 0xcb5   : > { %v1562_v10 = vmul.f32 %v1561_v6, %v1556_v5 }
 0xcb6   : > { %v2697_v8 = vpop.eup %2696 }
 0xcb7   : > { %v1557_v9 = vmul.f32 %v2697_v8, %v1541_v55  ;;  %v1568_v47 = vadd.f32 %v1567_v11, %v1562_v10 }
 0xcb9   : > { %v1563_v12 = vmul.f32 %v1561_v6, %v1557_v9  ;;  %v1756_v6 = vrot.slane %v3334_v4, %v710_v35  ;;  %v2656_v35 = vld [vmem:[%s3540_s9 + $0x8] sm:$0xff]  }
 0xcbb   : > { %v1569_v13 = vadd.f32 %v1567_v11, %v1563_v12 }
 0xcbd   : > { %v1570_v17 = vpack.c.bf16 %v1569_v13, %v1568_v47 }
 0xcbf   : > { %2498 = vmatmul.mubr.msk.bf16.vlgmr.msra.gmra.mxu0 %vm724_vm3, %v1570_v17  ;;  %v2657_v17 = vld [vmem:[%s3540_s9] sm:$0xff]  }
 0xcc0   : > { %2517 = vmatprep.mubr.msk.bf16.mxu0 %vm2901_vm0, %v2900_v0  ;;  %2514 = vmatpush3.bf16.msra.mxu0 %v2654_v59 }
 0xcc1   : > { %2515 = vmatprep.subr.bf16.mxu0 %v2900_v0 }
 0xcc4   : > { %2516 = vmatpush3.bf16.msra.mxu0 %v2655_v60 }
 0xcc5   : > { %2521 = vmatprep.subr.bf16.mxu0 %v2900_v0 }
 0xd7f   : > { %v1628_v24 = vpop.f32.mrf.mxu0 }
 0xd80   : > { %v1629_v27 = vadd.f32 %v1628_v24, %v1578_v23 }
 0xd81   : > { %v2499_v25 = vpop.f32.mrf.mxu0 }
 0xd82   : > { %v1635_v31 = vmax.f32 %v1629_v27, 0.0 }
 0xd83   : > { %v1631_v28 = vpop.f32.mrf.mxu0 }
 0xd84   : > { %v1632_v29 = vadd.f32 %v1631_v28, %v1578_v23 }
 0xd85   : > { %v2500_v30 = vpop.f32.mrf.mxu0 }
 0xd86   : > { %v1636_v33 = vmax.f32 %v1632_v29, 0.0  ;;  %v1835_v29 = vrot.slane %v3334_v4, %v842_v49  ;;  %v2661_v49 = vld [vmem:[%s3542_s11] sm:$0xff]  }
 0xd88   : > { %v1637_v34 = vpack.c.bf16 %v1636_v33, %v1635_v31 }
 0xd8a   : > { %2510 = vmatmul.mubr.msk.bf16.vlgmr.msra.gmra.mxu1 %vm1674_vm5, %v1637_v34 }
 0xd8b   : > { %2533 = vmatprep.mubr.msk.bf16.mxu1 %vm2901_vm0, %v2900_v0  ;;  %2530 = vmatpush3.bf16.msra.mxu1 %v2658_v18 }
 0xd8c   : > { %2531 = vmatprep.subr.bf16.mxu1 %v2900_v0 }
 0xd8f   : > { %2532 = vmatpush3.bf16.msra.mxu1 %v2659_v19 }
 0xe4a   : > { %v1712_v38 = vpop.f32.mrf.mxu1 }
 0xe4b   : > { %v1713_v39 = vadd.f32 %v1712_v38, %v1649_v37 }
 0xe4c   : > { %v2511_v40 = vpop.f32.mrf.mxu1 }
 0xe4d   : > { %v1719_v41 = vadd.f32 %v1713_v39, %v1568_v47  ;;  %v2660_v40 = vld [vmem:[%s3542_s11 + $0x8] sm:$0xff]  }
 0xe4e   : > { %v1715_v42 = vpop.f32.mrf.mxu1 }
 0xe4f   : > { %v1716_v43 = vadd.f32 %v1715_v42, %v1649_v37  ;;  %v1721_v44 = vsel %vm724_vm3, %v1719_v41, 0.0 }
 0xe50   : > { %1722 = vadd.xlane.f32.xlu1 %v1721_v44  ;;  %v2512_v45 = vpop.f32.mrf.mxu1 }
 0xe51   : > { %v1720_v52 = vadd.f32 %v1716_v43, %v1569_v13 }
 0xe53   : > { %v1724_v46 = vsel %vm724_vm3, %v1720_v52, 0.0 }
 0xe54   : > { %1725 = vadd.xlane.f32.xlu0 %v1724_v46 }
 0xed9   : > { %v1723_v48 = vpop.xlane.xlu1 %1722 }
 0xeda   : > { %v1727_v50 = vmul.f32 0.03125, %v1723_v48 }
 0xedc   : > { %v1729_v51 = vsub.f32 %v1719_v41, %v1727_v50  ;;  %v1899_v41 = vrot.slane %v3334_v4, %v1560_v22 }
 0xedd   : > { %v1726_v53 = vpop.xlane.xlu0 %1725 }
 0xede   : > { %v1728_v54 = vmul.f32 0.03125, %v1726_v53  ;;  %v1731_v16 = vmul.f32 %v1729_v51, %v1729_v51 }
 0xee0   : > { %v1730_v55 = vsub.f32 %v1720_v52, %v1728_v54  ;;  %v1733_v56 = vsel %vm724_vm3, %v1731_v16, 0.0 }
 0xee1   : > { %1734 = vadd.xlane.f32.xlu0 %v1733_v56 }
 0xee2   : > { %v1732_v57 = vmul.f32 %v1730_v55, %v1730_v55 }
 0xee4   : > { %v1736_v58 = vsel %vm724_vm3, %v1732_v57, 0.0 }
 0xee5   : > { %1737 = vadd.xlane.f32.xlu0 %v1736_v58 }
 0xf6a   : > { %v1735_v61 = vpop.xlane.xlu0 %1734 }
 0xf6b   : > { %v1739_v62 = vmul.f32 0.03125, %v1735_v61 }
 0xf6d   : > { %v1741_v63 = vadd.f32 1e-05, %v1739_v62 }
 0xf6e   : > { %v1738_v1 = vpop.xlane.xlu0 %1737 }
 0xf6f   : > { %2698 = vrsqrt.f32 %v1741_v63  ;;  %v1740_v2 = vmul.f32 0.03125, %v1738_v1 }
 0xf71   : > { %v1742_v3 = vadd.f32 1e-05, %v1740_v2 }
 0xf73   : > { %2700 = vrsqrt.f32 %v1742_v3 }
 0xf7c   : > { %v2699_v5 = vpop.eup %2698 }
 0xf7d   : > { %v1745_v8 = vmul.f32 %v2699_v5, %v1729_v51 }
 0xf7f   : > { %v1751_v9 = vmul.f32 %v1750_v26, %v1745_v8 }
 0xf80   : > { %v2701_v10 = vpop.eup %2700 }
 0xf81   : > { %v1746_v11 = vmul.f32 %v2701_v10, %v1730_v55  ;;  %v1757_v12 = vadd.f32 %v1756_v6, %v1751_v9 }
 0xf83   : > { %v1752_v47 = vmul.f32 %v1750_v26, %v1746_v11  ;;  %1759 = vst.msk [vmem:[%s3348_s16] sm:$0xff] %vm724_vm3, %v1757_v12 }
 0xf85   : > { %v1758_v15 = vadd.f32 %v1756_v6, %v1752_v47 }
 0xf87   : > { %v1761_v13 = vpack.c.bf16 %v1758_v15, %v1757_v12  ;;  %1760 = vst.msk [vmem:[%s3348_s16 + $0x8] sm:$0xff] %vm724_vm3, %v1758_v15  ;;  %s2754_s16 = scalar_lea.vmem %s3402_s22, 256 }
 0xf88   : > { %p2755_p13 = scmp.ne.s32.totalorder %s3402_s22, %s2754_s16 }
 0xf89   : > { %2518 = vmatmul.mubr.msk.bf16.vlgmr.msra.gmra.mxu0 %vm724_vm3, %v1761_v13 }
 0xf8a   : > { %2522 = vmatpush3.bf16.msra.mxu0 %v2656_v35  ;;  %2525 = vmatprep.mubr.msk.bf16.mxu0 %vm2901_vm0, %v2900_v0  ;;  %p2756_p6 = pnand %p2755_p13, %p3583_p0 }
 0xf8b   : > { %2523 = vmatprep.subr.bf16.mxu0 %v2900_v0 }
 0xf8c   : > { %p2757_p7 = pneg %p2756_p6 }
 0xf8e   : > { %2524 = vmatpush3.bf16.msra.mxu0 %v2657_v17 }
 0xf8f   : > { %2537 = vmatprep.subr.bf16.mxu0 %v2900_v0 }
 0xf91   : > { %2526 = vmatmul.mubr.msk.bf16.vlgmr.msra.gmra.mxu0 %vm724_vm3, %v1761_v13 }
 0xf92   : > { %2541 = vmatprep.mubr.msk.bf16.mxu0 %vm2901_vm0, %v2900_v0  ;;  %2538 = vmatpush3.bf16.msra.mxu0 %v2660_v40 }
 0xf93   : > { %2539 = vmatprep.subr.bf16.mxu0 %v2900_v0 }
 0xf96   : > { %2540 = vmatpush3.bf16.msra.mxu0 %v2661_v49 }
0x1049   : > { %v1819_v21 = vpop.f32.mrf.mxu0 }
0x104a   : > { %v1820_v23 = vadd.f32 %v1819_v21, %v1769_v20 }
0x104b   : > { %v2519_v24 = vpop.f32.mrf.mxu0 }
0x104c   : > { %1826 = vst [vmem:[%s3379_s17] sm:$0xff] %v1820_v23 }
0x104d   : > { %v1822_v25 = vpop.f32.mrf.mxu0 }
0x104e   : > { %v1823_v27 = vadd.f32 %v1822_v25, %v1769_v20 }
0x104f   : > { %v2520_v28 = vpop.f32.mrf.mxu0 }
0x1050   : > { %1827 = vst [vmem:[%s3379_s17 + $0x8] sm:$0xff] %v1823_v27  ;;  %s2909_s17 = smov [#allocation8]  }
0x1051   : > { %v1882_v30 = vpop.f32.mrf.mxu0  ;;  %s2758_s0 = sshll.u32 %s2909_s17, 4  ;;  %s2759_s0 = int_to_ptr.vmem [resolvable:$false] %s2758_s0 }
0x1052   : > { %v1883_v33 = vadd.f32 %v1882_v30, %v1835_v29  ;;  %s2760_s1 = scalar_lea.vmem %s2759_s0, 512  ;;  %p2761_p9 = scmp.lt.s32.totalorder %s3402_s22, %s2759_s0 }
0x1053   : > { %v2527_v31 = vpop.f32.mrf.mxu0  ;;  %p2762_p12 = scmp.lt.s32.totalorder %s2760_s1, %s2754_s16 }
0x1054   : > { %v1889_v37 = vmax.f32 %v1883_v33, 0.0 }
0x1055   : > { %v1885_v32 = vpop.f32.mrf.mxu0  ;;  %p2763_p1 = por %p2762_p12, %p2761_p9 }
0x1056   : > { %v1886_v34 = vadd.f32 %v1885_v32, %v1835_v29 }
0x1057   : > { %v2528_v36 = vpop.f32.mrf.mxu0  ;;  %p2764_p2 = pnand %p2763_p1, %p2757_p7 }
0x1058   : > { %v1890_v38 = vmax.f32 %v1886_v34, 0.0 }
0x105a   : > { %v1891_v39 = vpack.c.bf16 %v1890_v38, %v1889_v37 }
0x105c   : > { %2534 = vmatmul.mubr.msk.bf16.vlgmr.msra.gmra.mxu1 %vm724_vm3, %v1891_v39 }
0x111c   : > { %v1949_v42 = vpop.f32.mrf.mxu1 }
0x111d   : > { %v1950_v44 = vadd.f32 %v1949_v42, %v1899_v41 }
0x111e   : > { %v2535_v43 = vpop.f32.mrf.mxu1 }
0x111f   : > { %v1956_v48 = vmax.f32 %v1950_v44, 0.0 }
0x1120   : > { %v1952_v45 = vpop.f32.mrf.mxu1 }
0x1121   : > { %v1953_v52 = vadd.f32 %v1952_v45, %v1899_v41 }
0x1122   : > { %v2536_v46 = vpop.f32.mrf.mxu1 }
0x1123   : > { %v1957_v0 = vmax.f32 %v1953_v52, 0.0 }
0x1125   : > { %v1958_v50 = vpack.c.bf16 %v1957_v0, %v1956_v48 }
0x1127   : > { %2542 = vmatmul.mubr.msk.bf16.vlgmr.msra.gmra.mxu0 %vm724_vm3, %v1958_v50 }
0x1128   : > { %2767 = shalt.err (!%p2764_p2)
}
0x1129   : > { %s2768_s21 = scalar_lea.hbm %s3412_s27, 256  ;;  %s2772_s18 = scalar_lea.hbm %s3545_s14, 512 }
0x112a   : > { %p2769_p3 = scmp.ne.s32.totalorder %s3412_s27, %s2768_s21  ;;  %p2773_p4 = scmp.lt.s32.totalorder %s3412_s27, %s3545_s14 }
0x112b   : > { %p2774_p8 = scmp.lt.s32.totalorder %s2772_s18, %s2768_s21 }
0x112c   : > { %p2770_p5 = pnand %p2769_p3, %p3583_p0 }
0x112d   : > { %p2775_p10 = por %p2774_p8, %p2773_p4 }
0x112e   : > { %p2771_p11 = pneg %p2770_p5 }
0x1130   : > { %p2776_p13 = pnand %p2775_p10, %p2771_p11 }
0x1132   : > { %2779 = shalt.err (!%p2776_p13)
}
0x1133   : > { %s2910_s0 = smov 128   ;;  %s2911_s1 = smov 8  }
0x1134   : > { %2554 = dma.vmem_to_hbm [thread:$0]  (%p3583_p0), %s3402_s22, 256, %s3412_s27, %s3414_s25, %s2910_s0, %s2910_s0, %s2911_s1  }
0x1135   : > { %s3444_s24 = scalar_lea.hbm %s3544_s13, %s3406_s29  ;;  %s3584_s23 = sand.u32 1, %s2878_s19  }
0x1136   : > { %s2026_s18 = scalar_lea.sflag [#allocation4], %s3584_s23  ;;  %s2780_s26 = scalar_lea.vmem %s3400_s20, 256 }
0x1137   : > { %p2781_p6 = scmp.ne.s32.totalorder %s3400_s20, %s2780_s26  ;;  %s2912_s17 = smov [#allocation7]  }
0x1138   : > { %s2784_s2 = sshll.u32 %s2912_s17, 4  ;;  %s2785_s2 = int_to_ptr.vmem [resolvable:$false] %s2784_s2 }
0x1139   : > { %p2782_p7 = pnand %p2781_p6, %p3583_p0  ;;  %s2786_s3 = scalar_lea.vmem %s2785_s2, 512 }
0x113a   : > { %p2787_p12 = scmp.lt.s32.totalorder %s3400_s20, %s2785_s2  ;;  %p2788_p1 = scmp.lt.s32.totalorder %s2786_s3, %s2780_s26 }
0x113b   : > { %p2783_p9 = pneg %p2782_p7 }
0x113c   : > { %p2789_p2 = por %p2788_p1, %p2787_p12 }
0x113e   : > { %p2790_p3 = pnand %p2789_p2, %p2783_p9 }
0x1140   : > { %2793 = shalt.err (!%p2790_p3)
}
0x1141   : > { %s2794_s22 = scalar_lea.hbm %s3444_s24, 256  ;;  %s2798_s21 = scalar_lea.hbm %s3544_s13, 512 }
0x1142   : > { %p2795_p5 = scmp.ne.s32.totalorder %s3444_s24, %s2794_s22  ;;  %p2799_p8 = scmp.lt.s32.totalorder %s3444_s24, %s3544_s13 }
0x1143   : > { %p2800_p10 = scmp.lt.s32.totalorder %s2798_s21, %s2794_s22 }
0x1144   : > { %p2796_p11 = pnand %p2795_p5, %p3583_p0 }
0x1145   : > { %p2801_p13 = por %p2800_p10, %p2799_p8 }
0x1146   : > { %p2797_p4 = pneg %p2796_p11 }
0x1148   : > { %p2802_p6 = pnand %p2801_p13, %p2797_p4 }
0x114a   : > { %2805 = shalt.err (!%p2802_p6)
}
0x114b   : > { %2553 = dma.vmem_to_hbm [thread:$0]  (%p3583_p0), %s3400_s20, 256, %s3444_s24, %s2026_s18, %s2910_s0, %s2910_s0, %s2911_s1   ;;  %v1966_v22 = vrot.slane %v3334_v4, %v1566_v7 }
0x114c   : > { %s577_s2 = scalar_lea.vmem [#allocation10], %s3345_s30  ;;  %s3481_s24 = scalar_lea.hbm %s3546_s15, %s3406_s29 }
0x114d   : > { %s2087_s3 = sshll.u32 %s577_s2, 4  ;;  %s2913_s30 = smov [#allocation10]   ;;  %s3475_s3 = int_to_ptr.vmem [resolvable:$true] %s2087_s3 }
0x114e   : > { %s2806_s18 = scalar_lea.vmem %s3475_s3, 256  ;;  %s2810_s22 = sshll.u32 %s2913_s30, 4  ;;  %s2811_s22 = int_to_ptr.vmem [resolvable:$false] %s2810_s22 }
0x114f   : > { %p2807_p7 = scmp.ne.s32.totalorder %s3475_s3, %s2806_s18  ;;  %s2812_s27 = scalar_lea.vmem %s2811_s22, 512 }
0x1150   : > { %p2813_p1 = scmp.lt.s32.totalorder %s3475_s3, %s2811_s22  ;;  %p2814_p2 = scmp.lt.s32.totalorder %s2812_s27, %s2806_s18 }
0x1151   : > { %p2808_p9 = pnand %p2807_p7, %p3583_p0 }
0x1152   : > { %p2815_p3 = por %p2814_p2, %p2813_p1 }
0x1153   : > { %p2809_p12 = pneg %p2808_p9 }
0x1155   : > { %p2816_p5 = pnand %p2815_p3, %p2809_p12 }
0x11e7   : > { %v2016_v51 = vpop.f32.mrf.mxu0 }
0x11e8   : > { %v2017_v53 = vadd.f32 %v2016_v51, %v1966_v22 }
0x11e9   : > { %v2543_v54 = vpop.f32.mrf.mxu0 }
0x11ea   : > { %2023 = vst [vmem:[%s577_s2] sm:$0xff] %v2017_v53 }
0x11eb   : > { %v2019_v16 = vpop.f32.mrf.mxu0 }
0x11ec   : > { %v2020_v55 = vadd.f32 %v2019_v16, %v1966_v22 }
0x11ed   : > { %v2544_v14 = vpop.f32.mrf.mxu0 }
0x11ee   : > { %2024 = vst [vmem:[%s577_s2 + $0x8] sm:$0xff] %v2020_v55 }
0x11ef   : > { %2819 = shalt.err (!%p2816_p5)
}
0x11f0   : > { %s2820_s29 = scalar_lea.hbm %s3481_s24, 256  ;;  %s2824_s23 = scalar_lea.hbm %s3546_s15, 512 }
0x11f1   : > { %p2821_p11 = scmp.ne.s32.totalorder %s3481_s24, %s2820_s29  ;;  %p2825_p10 = scmp.lt.s32.totalorder %s3481_s24, %s3546_s15 }
0x11f2   : > { %p2826_p13 = scmp.lt.s32.totalorder %s2824_s23, %s2820_s29 }
0x11f3   : > { %p2822_p4 = pnand %p2821_p11, %p3583_p0 }
0x11f4   : > { %p2827_p6 = por %p2826_p13, %p2825_p10 }
0x11f5   : > { %p2823_p8 = pneg %p2822_p4 }
0x11f7   : > { %p2828_p7 = pnand %p2827_p6, %p2823_p8 }
0x11f9   : > { %2831 = shalt.err (!%p2828_p7)
}
0x11fa   : > { %2555 = dma.vmem_to_hbm [thread:$0]  (%p3583_p0), %s3475_s3, 256, %s3481_s24, %s3414_s25, %s2910_s0, %s2910_s0, %s2911_s1  }
0x11fb PF: > { %s3585_s26 = sld [smem:[#allocation18_spill]] }
0x11fc   : > { %s3586_s20 = sld [smem:[#allocation15_spill]] }
0x11fd   : > { %s3587_s18 = sld [smem:[#allocation20_spill]] }
0x1201   : > { %p2580_p9 = scmp.ge.s32.totalorder %s3585_s26, 2 }
0x1202   : > { %s2102_s30 = sand.u32 1, %s3586_s20  }
0x1203   : > { %p3588_p12 = scmp.ne.s32.totalorder %s3587_s18, 0  ;;  %s2103_s22 = scalar_lea.sflag [#allocation4], %s2102_s30 }
0x1205   : > { %p2567_p1 = pnand %p2580_p9, %p3588_p12 }
0x1207   : > { %p2568_p2 = pneg %p2567_p1 }
0x1209   : > { %2865 = dma.done.wait (%p2568_p2), %s2103_s22, 256  }
0x120a   : > { %2867 = vsyncadd (%p2568_p2), %s2103_s22, 4294967040  ;;  %s3589_s28 = sadd.s32 4294967294, %s3585_s26  }
0x120b   : > { %s2111_s27 = sand.u32 1, %s3589_s28  }
0x120c   : > { %s2112_s29 = scalar_lea.sflag [#allocation9], %s2111_s27 }
0x120d   : > { %2869 = dma.done.wait (%p2568_p2), %s2112_s29, 512  }
0x120e   : > { %2871 = vsyncadd (%p2568_p2), %s2112_s29, 4294966784  ;;  %s34_s23 = sadd.s32 1, %s3585_s26   ;;  %s3590_s25 = sld [smem:[#allocation16_spill]] }
0x120f   : > { %p31_p0 = scmp.ge.s32.totalorder %s34_s23, 4   ;;  %s3591_s20 = sld [smem:[#allocation21_spill]] }
0x1210   : > { %s3592_s21 = sld [smem:[#allocation17_spill]]  ;;  %s3594_s18 = smov %s2878_s19 }
0x1211   : > { %s3593_s22 = sld [smem:[#allocation19_spill]]  ;;  %33 = sbr.rel (!%p31_p0) target bundleno = 13 (0xd), region = 151 }
0x1214   : > { %s3595_s19 = smov %s3590_s25 }
0x1216   :  { %2126 = vsyncpa [#allocation3], 1 }
0x1217   :  { %2128 = vsyncpa [#allocation3 + $0x1], 1 }
0x1218   :  { %2129 = vsyncpa [#allocation6], 1 }
0x1219   :  { %2130 = vsyncpa [#allocation4], 1 }
0x121a   :  { %2132 = vsyncpa [#allocation4 + $0x1], 1 }
0x121b   :  { %2133 = vsyncpa [#allocation9], 1 }
0x121c   :  { %2135 = vsyncpa [#allocation9 + $0x1], 1 }

</bundles_post_ra>
